<compile_context>
chip_gen: v5e
topology: v5e:2x2
jax: 0.10.0
libtpu: 0.0.40
codegen_flags: <defaults>
</compile_context>

<pallas_src>
import functools
import math

import jax
import jax.numpy as jnp
from jax.experimental import pallas as pl
from jax.experimental.pallas import tpu as pltpu

COMPUTE_DTYPE = jnp.bfloat16      # matmul-input dtype; accumulation is always f32
_VMEM_LIMIT = 32 * 1024 * 1024    # explicit scoped-VMEM budget (safe on v5e/v6e/v7x)
_HALO = 8                         # sublane-aligned halo rows for conv2's time window


def _round_up(x, m):
    return ((x + m - 1) // m) * m


# ---------------------------------------------------------------------------
# Kernel 1: conv1 = Conv2d(1, C, 3, stride 2) + ReLU, as a tiled im2col matmul
# ---------------------------------------------------------------------------

def _conv1_kernel(a_ref, w_ref, b_ref, o_ref):
    acc = jnp.dot(a_ref[...], w_ref[...], preferred_element_type=jnp.float32)
    o_ref[...] = jnp.maximum(acc + b_ref[...], 0.0).astype(o_ref.dtype)


def conv1_matmul(p1_rows, w1, b1, *, tile_m, out_dtype):
    mp, k = p1_rows.shape
    c = w1.shape[1]
    itemsize = p1_rows.dtype.itemsize
    cost = pl.CostEstimate(
        flops=2 * mp * k * c,
        transcendentals=0,
        bytes_accessed=mp * k * itemsize + k * c * itemsize + mp * c * itemsize,
    )
    return pl.pallas_call(
        _conv1_kernel,
        out_shape=jax.ShapeDtypeStruct((mp, c), out_dtype),
        grid=(mp // tile_m,),
        in_specs=[
            pl.BlockSpec((tile_m, k), lambda i: (i, 0)),
            pl.BlockSpec((k, c), lambda i: (0, 0)),
            pl.BlockSpec((1, c), lambda i: (0, 0)),
        ],
        out_specs=pl.BlockSpec((tile_m, c), lambda i: (i, 0)),
        compiler_params=pltpu.CompilerParams(
            dimension_semantics=("parallel",),
            vmem_limit_bytes=_VMEM_LIMIT,
        ),
        cost_estimate=cost,
    )(p1_rows, w1, b1)


# ---------------------------------------------------------------------------
# Kernel 2: fused conv2 (Conv2d(C, C, 5, stride 3)) + ReLU + Linear + pos-enc.
#
# Grid = (batch, T2-tiles).  Each tile reads a window of 3*TT2 + 2 conv1 time
# steps (main block + first 2 rows of an 8-row halo block of the same array),
# forms the five stride-3 time taps in-register, and accumulates
#   acc[f2] += x_tap_i @ W2[i]          (K = 5*C, lane-dense)
# then applies bias + ReLU and the fused Linear + positional encoding before a
# single (TT2, C) store per tile.  No conv2 im2col ever touches HBM.
# ---------------------------------------------------------------------------

def _conv2_linear_posenc_kernel(main_ref, halo_ref, w2_ref, w3_ref,
                                b2_ref, b3_ref, pe_ref, o_ref, *,
                                tt2, f2, c, xscale):
    k5c = 5 * c
    # conv1 time-steps [3*TT2*tile, 3*TT2*tile + 3*TT2 + 2); halo gives the +2.
    win = jnp.concatenate([main_ref[0], halo_ref[0]], axis=0)   # (3*tt2+HALO, f2, 5c)
    b2 = b2_ref[...]

    acc = [jnp.zeros((tt2, c), jnp.float32) for _ in range(f2)]
    for i in range(5):                       # conv2 time taps (stride 3)
        # rows i, i+3, ..., i+3*(tt2-1): outer-dim regroup, no lane movement
        xi = win[i:i + 3 * tt2].reshape(tt2, 3, f2, k5c)[:, 0]  # (tt2, f2, 5c)
        w2i = w2_ref[i]                                          # (5c, c)
        for f in range(f2):                  # conv2 output freq positions
            acc[f] = acc[f] + jnp.dot(xi[:, f], w2i,
                                      preferred_element_type=jnp.float32)

    out = jnp.zeros((tt2, c), jnp.float32)
    for f in range(f2):                      # fused Linear over (cin, f2)
        hf = jnp.maximum(acc[f] + b2, 0.0).astype(w3_ref.dtype)
        out = out + jnp.dot(hf, w3_ref[f], preferred_element_type=jnp.float32)

    out = (out + b3_ref[...]) * xscale + pe_ref[...]
    o_ref[0] = out.astype(o_ref.dtype)


def conv2_linear_posenc(y1f, w2_taps, w3_taps, b2, b3, pe_pad, *,
                        tt2, xscale, out_dtype=jnp.float32):
    bsz, t1p, f2, k5c = y1f.shape
    c = w2_taps.shape[-1]
    t2p = pe_pad.shape[0]
    g = t2p // tt2
    itemsize = y1f.dtype.itemsize
    flops = 2 * bsz * t2p * f2 * (5 * k5c * c + c * c)
    bytes_accessed = (
        bsz * g * (3 * tt2 + _HALO) * f2 * k5c * itemsize
        + (w2_taps.size + w3_taps.size) * itemsize
        + bsz * t2p * c * 4
    )
    kernel = functools.partial(_conv2_linear_posenc_kernel,
                               tt2=tt2, f2=f2, c=c, xscale=float(xscale))
    return pl.pallas_call(
        kernel,
        out_shape=jax.ShapeDtypeStruct((bsz, t2p, c), out_dtype),
        grid=(bsz, g),
        in_specs=[
            # main window: 3*TT2 conv1 time steps
            pl.BlockSpec((1, 3 * tt2, f2, k5c), lambda b, i: (b, i, 0, 0)),
            # halo: next 8 rows of the same array (we use the first 2)
            pl.BlockSpec((1, _HALO, f2, k5c),
                         lambda b, i: (b, (3 * tt2 // _HALO) * (i + 1), 0, 0)),
            pl.BlockSpec((5, k5c, c), lambda b, i: (0, 0, 0)),     # conv2 taps
            pl.BlockSpec((f2, c, c), lambda b, i: (0, 0, 0)),      # linear taps
            pl.BlockSpec((1, c), lambda b, i: (0, 0)),             # conv2 bias
            pl.BlockSpec((1, c), lambda b, i: (0, 0)),             # linear bias
            pl.BlockSpec((tt2, c), lambda b, i: (i, 0)),           # pos-enc tile
        ],
        out_specs=pl.BlockSpec((1, tt2, c), lambda b, i: (b, i, 0)),
        compiler_params=pltpu.CompilerParams(
            dimension_semantics=("parallel", "parallel"),
            vmem_limit_bytes=_VMEM_LIMIT,
        ),
        cost_estimate=pl.CostEstimate(flops=flops, transcendentals=0,
                                      bytes_accessed=bytes_accessed),
    )(y1f, y1f, w2_taps, w3_taps, b2, b3, pe_pad)


# ---------------------------------------------------------------------------
# Glue: conv1 im2col, sinusoidal PE, parameter init / one-time prep
# ---------------------------------------------------------------------------

def _im2col_conv1(x):
    """x: (B, T, D) -> patches (B, T1, F1, 9), column order (i, j)."""
    _, t, d = x.shape
    t1 = (t - 3) // 2 + 1
    f1 = (d - 3) // 2 + 1
    cols = []
    for i in range(3):
        for j in range(3):
            cols.append(x[:, i:i + 2 * (t1 - 1) + 1:2, j:j + 2 * (f1 - 1) + 1:2])
    return jnp.stack(cols, axis=-1), t1, f1


def sinusoid_pos_enc(length, d_model):
    pos = jnp.arange(length, dtype=jnp.float32)[:, None]
    div = jnp.exp(jnp.arange(0, d_model, 2, dtype=jnp.float32)
                  * -(math.log(10000.0) / d_model))
    pe = jnp.zeros((length, d_model), dtype=jnp.float32)
    pe = pe.at[:, 0::2].set(jnp.sin(pos * div))
    pe = pe.at[:, 1::2].set(jnp.cos(pos * div))
    return pe


def init_params(key, input_dim, output_dim):
    """PyTorch-layout parameters (same layout as the nn.Module state_dict)."""
    c = output_dim
    f2 = ((input_dim - 1) // 2 - 2) // 3
    k1, k2, k3, k4, k5, k6 = jax.random.split(key, 6)
    return {
        "w1": 0.1 * jax.random.normal(k1, (c, 1, 3, 3), jnp.float32),
        "b1": 0.1 * jax.random.normal(k2, (c,), jnp.float32),
        "w2": 0.05 * jax.random.normal(k3, (c, c, 5, 5), jnp.float32),
        "b2": 0.1 * jax.random.normal(k4, (c,), jnp.float32),
        "w3": 0.1 * jax.random.normal(k5, (c, c * f2), jnp.float32),
        "b3": 0.1 * jax.random.normal(k6, (c,), jnp.float32),
    }


def prepare_params(params, compute_dtype=COMPUTE_DTYPE):
    """One-time re-layout of PyTorch weights into kernel-friendly matrices."""
    c = params["b1"].shape[0]
    f2 = params["w3"].shape[1] // c
    # conv1: (Cout,1,3,3) -> (9, C); row order (i, j) = torch contiguous flatten.
    w1 = params["w1"].reshape(c, 9).T
    # conv2: (Cout,Cin,5,5) -> per time-tap i a (5*C, C) matrix, rows ordered
    #        (freq-tap j, cin) to match the in-kernel activation lane order.
    w2 = jnp.transpose(params["w2"], (2, 3, 1, 0)).reshape(5, 5 * c, c)
    # linear: torch flattens its input as (cin, f2); we keep per-f2 (.., cin)
    #         slabs, so split into per-f2 (C, C) matrices.
    w3 = jnp.transpose(params["w3"].reshape(c, c, f2), (2, 1, 0))
    return {
        "w1": w1.astype(compute_dtype),
        "b1": params["b1"].reshape(1, c).astype(jnp.float32),
        "w2": w2.astype(compute_dtype),
        "b2": params["b2"].reshape(1, c).astype(jnp.float32),
        "w3": w3.astype(compute_dtype),
        "b3": params["b3"].reshape(1, c).astype(jnp.float32),
    }


# ---------------------------------------------------------------------------
# Forward pass
# ---------------------------------------------------------------------------

def conv2d_subsampling6_forward(prepped, x, x_mask, offset=0):
    """x: (B, T, D) f32, x_mask: (B, 1, T) bool -> (out, pos_emb, mask)."""
    bsz, t, d = x.shape
    c = prepped["b1"].shape[1]
    f2 = prepped["w3"].shape[0]
    cdt = prepped["w1"].dtype

    t1 = (t - 3) // 2 + 1
    f1 = (d - 3) // 2 + 1
    t2 = (t1 - 5) // 3 + 1
    assert f2 == (f1 - 5) // 3 + 1, "input_dim inconsistent with the Linear layer"

    # ---- conv1: cheap 9x im2col of the raw input + tiled matmul kernel ------
    p1, _, _ = _im2col_conv1(x)                           # (B, T1, F1, 9)
    m1 = bsz * t1 * f1
    tile_m = min(1024, _round_up(m1, 8))
    m1p = _round_up(m1, tile_m)
    p1 = p1.reshape(m1, 9)
    if m1p > m1:
        p1 = jnp.pad(p1, ((0, m1p - m1), (0, 0)))
    y1 = conv1_matmul(p1.astype(cdt), prepped["w1"], prepped["b1"],
                      tile_m=tile_m, out_dtype=cdt)       # (M1p, C)
    y1 = y1[:m1].reshape(bsz, t1, f1, c)

    # ---- pre-gather conv2's 5 freq taps: (B, T1, F2, 5*C), lanes = (j, cin) --
    # (only ~5/3x of y1; the full 25x time*freq patch is built inside the kernel)
    cols = [y1[:, :, j:j + 3 * (f2 - 1) + 1:3, :] for j in range(5)]
    y1f = jnp.stack(cols, axis=3).reshape(bsz, t1, f2, 5 * c)

    # ---- fused conv2 + ReLU + Linear + pos-enc, tiled over (batch, T2) -------
    tt2 = min(32, _round_up(t2, 8))                       # multiple of 8 (halo math)
    g = pl.cdiv(t2, tt2)
    t2p = tt2 * g
    t1p = 3 * tt2 * g + _HALO
    y1f = jnp.pad(y1f, ((0, 0), (0, t1p - t1), (0, 0), (0, 0)))

    pe = sinusoid_pos_enc(offset + t2, c)[offset:offset + t2]   # (T2, C) f32
    pe_pad = jnp.pad(pe, ((0, t2p - t2), (0, 0)))

    out = conv2_linear_posenc(y1f, prepped["w2"], prepped["w3"],
                              prepped["b2"], prepped["b3"], pe_pad,
                              tt2=tt2, xscale=math.sqrt(c))
    out = out[:, :t2, :]
    pos_emb = pe[None, :, :]

    # ---- mask subsampling: x_mask[:, :, :-2:2][:, :, :-4:3] ------------------
    mask = x_mask[:, :, :-2:2][:, :, :-4:3]
    return out, pos_emb, mask


# ---------------------------------------------------------------------------
# Main
# ---------------------------------------------------------------------------

if __name__ == "__main__":
    B, T, D = 2, 26, 23        # input_dim = 23 -> F2 = 3, T2 = 3
    OUTPUT_DIM = 16

    key = jax.random.PRNGKey(0)
    kx, kp = jax.random.split(key)
    x = jax.random.normal(kx, (B, T, D), dtype=jnp.float32)
    x_mask = jnp.ones((B, 1, T), dtype=bool)

    params = init_params(kp, input_dim=D, output_dim=OUTPUT_DIM)
    prepped = prepare_params(params)                 # one-time weight re-layout

    fwd = jax.jit(conv2d_subsampling6_forward, static_argnames=("offset",))
    out, pos_emb, mask = fwd(prepped, x, x_mask, offset=0)
    out, pos_emb, mask = jax.block_until_ready((out, pos_emb, mask))

    t2 = out.shape[1]
    assert out.shape == (B, t2, OUTPUT_DIM)
    assert pos_emb.shape == (1, t2, OUTPUT_DIM)
    assert mask.shape == (B, 1, t2)
    assert bool(jnp.all(jnp.isfinite(out)))

    print("KERNEL_OK")
</pallas_src>

<mosaic_0001>
module attributes {stable_mosaic.version = 11 : i64} {
  func.func @_conv1_kernel(%arg0: i32, %arg1: memref<264x9xbf16, #tpu.memory_space<vmem>>, %arg2: memref<9x16xbf16, #tpu.memory_space<vmem>>, %arg3: memref<1x16xf32, #tpu.memory_space<vmem>>, %arg4: memref<264x16xbf16, #tpu.memory_space<vmem>>) attributes {dimension_semantics = [#tpu.dimension_semantics<parallel>], iteration_bounds = array<i64: 1>, scalar_prefetch = 0 : i64, scratch_operands = 0 : i64, tpu.core_type = #tpu.core_type<tc>, window_params = [{transform_indices = @transform_0, window_bounds = array<i64: 264, 9>}, {pipeline_mode = #tpu.pipeline_mode<synchronous>, transform_indices = @transform_1, window_bounds = array<i64: 9, 16>}, {pipeline_mode = #tpu.pipeline_mode<synchronous>, transform_indices = @transform_2, window_bounds = array<i64: 1, 16>}, {transform_indices = @transform_3, window_bounds = array<i64: 264, 16>}]} {
    %c0 = arith.constant 0 : index
    %c0_0 = arith.constant 0 : index
    %0 = vector.load %arg1[%c0, %c0_0] : memref<264x9xbf16, #tpu.memory_space<vmem>>, vector<264x9xbf16>
    %c0_1 = arith.constant 0 : index
    %c0_2 = arith.constant 0 : index
    %1 = vector.load %arg2[%c0_1, %c0_2] : memref<9x16xbf16, #tpu.memory_space<vmem>>, vector<9x16xbf16>
    %cst = arith.constant dense<0.000000e+00> : vector<264x16xf32>
    %2 = tpu.matmul %0, %1, %cst {dimension_numbers = #tpu.dot_dimension_numbers<[1], [0], [0], [1], [0, 0, 1, 1], [], []>} : vector<264x9xbf16>, vector<9x16xbf16>, vector<264x16xf32> -> vector<264x16xf32>
    %c0_3 = arith.constant 0 : index
    %c0_4 = arith.constant 0 : index
    %3 = vector.load %arg3[%c0_3, %c0_4] : memref<1x16xf32, #tpu.memory_space<vmem>>, vector<1x16xf32>
    %4 = vector.broadcast %3 : vector<1x16xf32> to vector<264x16xf32>
    %5 = arith.addf %2, %4 : vector<264x16xf32>
    %cst_5 = arith.constant 0.000000e+00 : f32
    %6 = vector.broadcast %cst_5 : f32 to vector<264x16xf32>
    %7 = arith.maximumf %5, %6 : vector<264x16xf32>
    %8 = arith.truncf %7 : vector<264x16xf32> to vector<264x16xbf16>
    %c0_6 = arith.constant 0 : index
    %c0_7 = arith.constant 0 : index
    %9 = vector.load %arg4[%c0_6, %c0_7] : memref<264x16xbf16, #tpu.memory_space<vmem>>, vector<264x16xbf16>
    tpu.vector_store %arg4[%c0_6, %c0_7], %8 {strides = array<i32>} : memref<264x16xbf16, #tpu.memory_space<vmem>>, vector<264x16xbf16>,
    return
  }
  func.func @transform_0(%arg0: i32) -> (i32, i32) {
    %c0_i32 = arith.constant 0 : i32
    %c0_i32_0 = arith.constant 0 : i32
    return %arg0, %c0_i32 : i32, i32
  }
  func.func @transform_1(%arg0: i32) -> (i32, i32) {
    %c0_i32 = arith.constant 0 : i32
    %c0_i32_0 = arith.constant 0 : i32
    %c0_i32_1 = arith.constant 0 : i32
    return %c0_i32, %c0_i32_0 : i32, i32
  }
  func.func @transform_2(%arg0: i32) -> (i32, i32) {
    %c0_i32 = arith.constant 0 : i32
    %c0_i32_0 = arith.constant 0 : i32
    %c0_i32_1 = arith.constant 0 : i32
    return %c0_i32, %c0_i32_0 : i32, i32
  }
  func.func @transform_3(%arg0: i32) -> (i32, i32) {
    %c0_i32 = arith.constant 0 : i32
    %c0_i32_0 = arith.constant 0 : i32
    return %arg0, %c0_i32 : i32, i32
  }
}

module attributes {stable_mosaic.version = 11 : i64} {
  func.func @_conv2_linear_posenc_kernel(%arg0: i32, %arg1: i32, %arg2: memref<1x24x3x80xbf16, #tpu.memory_space<vmem>>, %arg3: memref<1x8x3x80xbf16, #tpu.memory_space<vmem>>, %arg4: memref<5x80x16xbf16, #tpu.memory_space<vmem>>, %arg5: memref<3x16x16xbf16, #tpu.memory_space<vmem>>, %arg6: memref<1x16xf32, #tpu.memory_space<vmem>>, %arg7: memref<1x16xf32, #tpu.memory_space<vmem>>, %arg8: memref<8x16xf32, #tpu.memory_space<vmem>>, %arg9: memref<1x8x16xf32, #tpu.memory_space<vmem>>) attributes {dimension_semantics = [#tpu.dimension_semantics<parallel>, #tpu.dimension_semantics<parallel>], iteration_bounds = array<i64: 2, 1>, scalar_prefetch = 0 : i64, scratch_operands = 0 : i64, tpu.core_type = #tpu.core_type<tc>, window_params = [{transform_indices = @transform_0, window_bounds = array<i64: 1, 24, 3, 80>}, {transform_indices = @transform_1, window_bounds = array<i64: 1, 8, 3, 80>}, {pipeline_mode = #tpu.pipeline_mode<synchronous>, transform_indices = @transform_2, window_bounds = array<i64: 5, 80, 16>}, {pipeline_mode = #tpu.pipeline_mode<synchronous>, transform_indices = @transform_3, window_bounds = array<i64: 3, 16, 16>}, {pipeline_mode = #tpu.pipeline_mode<synchronous>, transform_indices = @transform_4, window_bounds = array<i64: 1, 16>}, {pipeline_mode = #tpu.pipeline_mode<synchronous>, transform_indices = @transform_5, window_bounds = array<i64: 1, 16>}, {transform_indices = @transform_6, window_bounds = array<i64: 8, 16>}, {transform_indices = @transform_7, window_bounds = array<i64: 1, 8, 16>}]} {
    %c0 = arith.constant 0 : index
    %c0_0 = arith.constant 0 : index
    %c0_1 = arith.constant 0 : index
    %c0_2 = arith.constant 0 : index
    %0 = vector.load %arg2[%c0, %c0_0, %c0_1, %c0_2] : memref<1x24x3x80xbf16, #tpu.memory_space<vmem>>, vector<1x24x3x80xbf16>
    %1 = vector.shape_cast %0 : vector<1x24x3x80xbf16> to vector<24x3x80xbf16>
    %c0_3 = arith.constant 0 : index
    %c0_4 = arith.constant 0 : index
    %c0_5 = arith.constant 0 : index
    %c0_6 = arith.constant 0 : index
    %2 = vector.load %arg3[%c0_3, %c0_4, %c0_5, %c0_6] : memref<1x8x3x80xbf16, #tpu.memory_space<vmem>>, vector<1x8x3x80xbf16>
    %3 = vector.shape_cast %2 : vector<1x8x3x80xbf16> to vector<8x3x80xbf16>
    %4 = tpu.concatenate %1, %3 in 0 : vector<24x3x80xbf16>, vector<8x3x80xbf16> -> vector<32x3x80xbf16>
    %c0_7 = arith.constant 0 : index
    %c0_8 = arith.constant 0 : index
    %5 = vector.load %arg6[%c0_7, %c0_8] : memref<1x16xf32, #tpu.memory_space<vmem>>, vector<1x16xf32>
    %cst = arith.constant 0.000000e+00 : f32
    %6 = vector.broadcast %cst : f32 to vector<8x16xf32>
    %cst_9 = arith.constant 0.000000e+00 : f32
    %7 = vector.broadcast %cst_9 : f32 to vector<8x16xf32>
    %cst_10 = arith.constant 0.000000e+00 : f32
    %8 = vector.broadcast %cst_10 : f32 to vector<8x16xf32>
    %9 = vector.extract_strided_slice %4 {offsets = [0, 0, 0], sizes = [24, 3, 80], strides = [1, 1, 1]} : vector<32x3x80xbf16> to vector<24x3x80xbf16>
    %10 = vector.shape_cast %9 : vector<24x3x80xbf16> to vector<8x3x3x80xbf16>
    %11 = vector.extract_strided_slice %10 {offsets = [0, 0, 0, 0], sizes = [8, 1, 3, 80], strides = [1, 1, 1, 1]} : vector<8x3x3x80xbf16> to vector<8x1x3x80xbf16>
    %12 = vector.shape_cast %11 : vector<8x1x3x80xbf16> to vector<8x3x80xbf16>
    %c0_11 = arith.constant 0 : index
    %c0_12 = arith.constant 0 : index
    %c0_13 = arith.constant 0 : index
    %13 = vector.load %arg4[%c0_11, %c0_12, %c0_13] : memref<5x80x16xbf16, #tpu.memory_space<vmem>>, vector<1x80x16xbf16>
    %14 = vector.shape_cast %13 : vector<1x80x16xbf16> to vector<80x16xbf16>
    %15 = vector.extract_strided_slice %12 {offsets = [0, 0, 0], sizes = [8, 1, 80], strides = [1, 1, 1]} : vector<8x3x80xbf16> to vector<8x1x80xbf16>
    %16 = vector.shape_cast %15 : vector<8x1x80xbf16> to vector<8x80xbf16>
    %cst_14 = arith.constant dense<0.000000e+00> : vector<8x16xf32>
    %17 = tpu.matmul %16, %14, %cst_14 {dimension_numbers = #tpu.dot_dimension_numbers<[1], [0], [0], [1], [0, 0, 1, 1], [], []>} : vector<8x80xbf16>, vector<80x16xbf16>, vector<8x16xf32> -> vector<8x16xf32>
    %18 = arith.addf %6, %17 : vector<8x16xf32>
    %19 = vector.extract_strided_slice %12 {offsets = [0, 1, 0], sizes = [8, 1, 80], strides = [1, 1, 1]} : vector<8x3x80xbf16> to vector<8x1x80xbf16>
    %20 = vector.shape_cast %19 : vector<8x1x80xbf16> to vector<8x80xbf16>
    %cst_15 = arith.constant dense<0.000000e+00> : vector<8x16xf32>
    %21 = tpu.matmul %20, %14, %cst_15 {dimension_numbers = #tpu.dot_dimension_numbers<[1], [0], [0], [1], [0, 0, 1, 1], [], []>} : vector<8x80xbf16>, vector<80x16xbf16>, vector<8x16xf32> -> vector<8x16xf32>
    %22 = arith.addf %7, %21 : vector<8x16xf32>
    %23 = vector.extract_strided_slice %12 {offsets = [0, 2, 0], sizes = [8, 1, 80], strides = [1, 1, 1]} : vector<8x3x80xbf16> to vector<8x1x80xbf16>
    %24 = vector.shape_cast %23 : vector<8x1x80xbf16> to vector<8x80xbf16>
    %cst_16 = arith.constant dense<0.000000e+00> : vector<8x16xf32>
    %25 = tpu.matmul %24, %14, %cst_16 {dimension_numbers = #tpu.dot_dimension_numbers<[1], [0], [0], [1], [0, 0, 1, 1], [], []>} : vector<8x80xbf16>, vector<80x16xbf16>, vector<8x16xf32> -> vector<8x16xf32>
    %26 = arith.addf %8, %25 : vector<8x16xf32>
    %27 = vector.extract_strided_slice %4 {offsets = [1, 0, 0], sizes = [24, 3, 80], strides = [1, 1, 1]} : vector<32x3x80xbf16> to vector<24x3x80xbf16>
    %28 = vector.shape_cast %27 : vector<24x3x80xbf16> to vector<8x3x3x80xbf16>
    %29 = vector.extract_strided_slice %28 {offsets = [0, 0, 0, 0], sizes = [8, 1, 3, 80], strides = [1, 1, 1, 1]} : vector<8x3x3x80xbf16> to vector<8x1x3x80xbf16>
    %30 = vector.shape_cast %29 : vector<8x1x3x80xbf16> to vector<8x3x80xbf16>
    %c1 = arith.constant 1 : index
    %c0_17 = arith.constant 0 : index
    %c0_18 = arith.constant 0 : index
    %31 = vector.load %arg4[%c1, %c0_17, %c0_18] : memref<5x80x16xbf16, #tpu.memory_space<vmem>>, vector<1x80x16xbf16>
    %32 = vector.shape_cast %31 : vector<1x80x16xbf16> to vector<80x16xbf16>
    %33 = vector.extract_strided_slice %30 {offsets = [0, 0, 0], sizes = [8, 1, 80], strides = [1, 1, 1]} : vector<8x3x80xbf16> to vector<8x1x80xbf16>
    %34 = vector.shape_cast %33 : vector<8x1x80xbf16> to vector<8x80xbf16>
    %cst_19 = arith.constant dense<0.000000e+00> : vector<8x16xf32>
    %35 = tpu.matmul %34, %32, %cst_19 {dimension_numbers = #tpu.dot_dimension_numbers<[1], [0], [0], [1], [0, 0, 1, 1], [], []>} : vector<8x80xbf16>, vector<80x16xbf16>, vector<8x16xf32> -> vector<8x16xf32>
    %36 = arith.addf %18, %35 : vector<8x16xf32>
    %37 = vector.extract_strided_slice %30 {offsets = [0, 1, 0], sizes = [8, 1, 80], strides = [1, 1, 1]} : vector<8x3x80xbf16> to vector<8x1x80xbf16>
    %38 = vector.shape_cast %37 : vector<8x1x80xbf16> to vector<8x80xbf16>
    %cst_20 = arith.constant dense<0.000000e+00> : vector<8x16xf32>
    %39 = tpu.matmul %38, %32, %cst_20 {dimension_numbers = #tpu.dot_dimension_numbers<[1], [0], [0], [1], [0, 0, 1, 1], [], []>} : vector<8x80xbf16>, vector<80x16xbf16>, vector<8x16xf32> -> vector<8x16xf32>
    %40 = arith.addf %22, %39 : vector<8x16xf32>
    %41 = vector.extract_strided_slice %30 {offsets = [0, 2, 0], sizes = [8, 1, 80], strides = [1, 1, 1]} : vector<8x3x80xbf16> to vector<8x1x80xbf16>
    %42 = vector.shape_cast %41 : vector<8x1x80xbf16> to vector<8x80xbf16>
    %cst_21 = arith.constant dense<0.000000e+00> : vector<8x16xf32>
    %43 = tpu.matmul %42, %32, %cst_21 {dimension_numbers = #tpu.dot_dimension_numbers<[1], [0], [0], [1], [0, 0, 1, 1], [], []>} : vector<8x80xbf16>, vector<80x16xbf16>, vector<8x16xf32> -> vector<8x16xf32>
    %44 = arith.addf %26, %43 : vector<8x16xf32>
    %45 = vector.extract_strided_slice %4 {offsets = [2, 0, 0], sizes = [24, 3, 80], strides = [1, 1, 1]} : vector<32x3x80xbf16> to vector<24x3x80xbf16>
    %46 = vector.shape_cast %45 : vector<24x3x80xbf16> to vector<8x3x3x80xbf16>
    %47 = vector.extract_strided_slice %46 {offsets = [0, 0, 0, 0], sizes = [8, 1, 3, 80], strides = [1, 1, 1, 1]} : vector<8x3x3x80xbf16> to vector<8x1x3x80xbf16>
    %48 = vector.shape_cast %47 : vector<8x1x3x80xbf16> to vector<8x3x80xbf16>
    %c2 = arith.constant 2 : index
    %c0_22 = arith.constant 0 : index
    %c0_23 = arith.constant 0 : index
    %49 = vector.load %arg4[%c2, %c0_22, %c0_23] : memref<5x80x16xbf16, #tpu.memory_space<vmem>>, vector<1x80x16xbf16>
    %50 = vector.shape_cast %49 : vector<1x80x16xbf16> to vector<80x16xbf16>
    %51 = vector.extract_strided_slice %48 {offsets = [0, 0, 0], sizes = [8, 1, 80], strides = [1, 1, 1]} : vector<8x3x80xbf16> to vector<8x1x80xbf16>
    %52 = vector.shape_cast %51 : vector<8x1x80xbf16> to vector<8x80xbf16>
    %cst_24 = arith.constant dense<0.000000e+00> : vector<8x16xf32>
    %53 = tpu.matmul %52, %50, %cst_24 {dimension_numbers = #tpu.dot_dimension_numbers<[1], [0], [0], [1], [0, 0, 1, 1], [], []>} : vector<8x80xbf16>, vector<80x16xbf16>, vector<8x16xf32> -> vector<8x16xf32>
    %54 = arith.addf %36, %53 : vector<8x16xf32>
    %55 = vector.extract_strided_slice %48 {offsets = [0, 1, 0], sizes = [8, 1, 80], strides = [1, 1, 1]} : vector<8x3x80xbf16> to vector<8x1x80xbf16>
    %56 = vector.shape_cast %55 : vector<8x1x80xbf16> to vector<8x80xbf16>
    %cst_25 = arith.constant dense<0.000000e+00> : vector<8x16xf32>
    %57 = tpu.matmul %56, %50, %cst_25 {dimension_numbers = #tpu.dot_dimension_numbers<[1], [0], [0], [1], [0, 0, 1, 1], [], []>} : vector<8x80xbf16>, vector<80x16xbf16>, vector<8x16xf32> -> vector<8x16xf32>
    %58 = arith.addf %40, %57 : vector<8x16xf32>
    %59 = vector.extract_strided_slice %48 {offsets = [0, 2, 0], sizes = [8, 1, 80], strides = [1, 1, 1]} : vector<8x3x80xbf16> to vector<8x1x80xbf16>
    %60 = vector.shape_cast %59 : vector<8x1x80xbf16> to vector<8x80xbf16>
    %cst_26 = arith.constant dense<0.000000e+00> : vector<8x16xf32>
    %61 = tpu.matmul %60, %50, %cst_26 {dimension_numbers = #tpu.dot_dimension_numbers<[1], [0], [0], [1], [0, 0, 1, 1], [], []>} : vector<8x80xbf16>, vector<80x16xbf16>, vector<8x16xf32> -> vector<8x16xf32>
    %62 = arith.addf %44, %61 : vector<8x16xf32>
    %63 = vector.extract_strided_slice %4 {offsets = [3, 0, 0], sizes = [24, 3, 80], strides = [1, 1, 1]} : vector<32x3x80xbf16> to vector<24x3x80xbf16>
    %64 = vector.shape_cast %63 : vector<24x3x80xbf16> to vector<8x3x3x80xbf16>
    %65 = vector.extract_strided_slice %64 {offsets = [0, 0, 0, 0], sizes = [8, 1, 3, 80], strides = [1, 1, 1, 1]} : vector<8x3x3x80xbf16> to vector<8x1x3x80xbf16>
    %66 = vector.shape_cast %65 : vector<8x1x3x80xbf16> to vector<8x3x80xbf16>
    %c3 = arith.constant 3 : index
    %c0_27 = arith.constant 0 : index
    %c0_28 = arith.constant 0 : index
    %67 = vector.load %arg4[%c3, %c0_27, %c0_28] : memref<5x80x16xbf16, #tpu.memory_space<vmem>>, vector<1x80x16xbf16>
    %68 = vector.shape_cast %67 : vector<1x80x16xbf16> to vector<80x16xbf16>
    %69 = vector.extract_strided_slice %66 {offsets = [0, 0, 0], sizes = [8, 1, 80], strides = [1, 1, 1]} : vector<8x3x80xbf16> to vector<8x1x80xbf16>
    %70 = vector.shape_cast %69 : vector<8x1x80xbf16> to vector<8x80xbf16>
    %cst_29 = arith.constant dense<0.000000e+00> : vector<8x16xf32>
    %71 = tpu.matmul %70, %68, %cst_29 {dimension_numbers = #tpu.dot_dimension_numbers<[1], [0], [0], [1], [0, 0, 1, 1], [], []>} : vector<8x80xbf16>, vector<80x16xbf16>, vector<8x16xf32> -> vector<8x16xf32>
    %72 = arith.addf %54, %71 : vector<8x16xf32>
    %73 = vector.extract_strided_slice %66 {offsets = [0, 1, 0], sizes = [8, 1, 80], strides = [1, 1, 1]} : vector<8x3x80xbf16> to vector<8x1x80xbf16>
    %74 = vector.shape_cast %73 : vector<8x1x80xbf16> to vector<8x80xbf16>
    %cst_30 = arith.constant dense<0.000000e+00> : vector<8x16xf32>
    %75 = tpu.matmul %74, %68, %cst_30 {dimension_numbers = #tpu.dot_dimension_numbers<[1], [0], [0], [1], [0, 0, 1, 1], [], []>} : vector<8x80xbf16>, vector<80x16xbf16>, vector<8x16xf32> -> vector<8x16xf32>
    %76 = arith.addf %58, %75 : vector<8x16xf32>
    %77 = vector.extract_strided_slice %66 {offsets = [0, 2, 0], sizes = [8, 1, 80], strides = [1, 1, 1]} : vector<8x3x80xbf16> to vector<8x1x80xbf16>
    %78 = vector.shape_cast %77 : vector<8x1x80xbf16> to vector<8x80xbf16>
    %cst_31 = arith.constant dense<0.000000e+00> : vector<8x16xf32>
    %79 = tpu.matmul %78, %68, %cst_31 {dimension_numbers = #tpu.dot_dimension_numbers<[1], [0], [0], [1], [0, 0, 1, 1], [], []>} : vector<8x80xbf16>, vector<80x16xbf16>, vector<8x16xf32> -> vector<8x16xf32>
    %80 = arith.addf %62, %79 : vector<8x16xf32>
    %81 = vector.extract_strided_slice %4 {offsets = [4, 0, 0], sizes = [24, 3, 80], strides = [1, 1, 1]} : vector<32x3x80xbf16> to vector<24x3x80xbf16>
    %82 = vector.shape_cast %81 : vector<24x3x80xbf16> to vector<8x3x3x80xbf16>
    %83 = vector.extract_strided_slice %82 {offsets = [0, 0, 0, 0], sizes = [8, 1, 3, 80], strides = [1, 1, 1, 1]} : vector<8x3x3x80xbf16> to vector<8x1x3x80xbf16>
    %84 = vector.shape_cast %83 : vector<8x1x3x80xbf16> to vector<8x3x80xbf16>
    %c4 = arith.constant 4 : index
    %c0_32 = arith.constant 0 : index
    %c0_33 = arith.constant 0 : index
    %85 = vector.load %arg4[%c4, %c0_32, %c0_33] : memref<5x80x16xbf16, #tpu.memory_space<vmem>>, vector<1x80x16xbf16>
    %86 = vector.shape_cast %85 : vector<1x80x16xbf16> to vector<80x16xbf16>
    %87 = vector.extract_strided_slice %84 {offsets = [0, 0, 0], sizes = [8, 1, 80], strides = [1, 1, 1]} : vector<8x3x80xbf16> to vector<8x1x80xbf16>
    %88 = vector.shape_cast %87 : vector<8x1x80xbf16> to vector<8x80xbf16>
    %cst_34 = arith.constant dense<0.000000e+00> : vector<8x16xf32>
    %89 = tpu.matmul %88, %86, %cst_34 {dimension_numbers = #tpu.dot_dimension_numbers<[1], [0], [0], [1], [0, 0, 1, 1], [], []>} : vector<8x80xbf16>, vector<80x16xbf16>, vector<8x16xf32> -> vector<8x16xf32>
    %90 = arith.addf %72, %89 : vector<8x16xf32>
    %91 = vector.extract_strided_slice %84 {offsets = [0, 1, 0], sizes = [8, 1, 80], strides = [1, 1, 1]} : vector<8x3x80xbf16> to vector<8x1x80xbf16>
    %92 = vector.shape_cast %91 : vector<8x1x80xbf16> to vector<8x80xbf16>
    %cst_35 = arith.constant dense<0.000000e+00> : vector<8x16xf32>
    %93 = tpu.matmul %92, %86, %cst_35 {dimension_numbers = #tpu.dot_dimension_numbers<[1], [0], [0], [1], [0, 0, 1, 1], [], []>} : vector<8x80xbf16>, vector<80x16xbf16>, vector<8x16xf32> -> vector<8x16xf32>
    %94 = arith.addf %76, %93 : vector<8x16xf32>
    %95 = vector.extract_strided_slice %84 {offsets = [0, 2, 0], sizes = [8, 1, 80], strides = [1, 1, 1]} : vector<8x3x80xbf16> to vector<8x1x80xbf16>
    %96 = vector.shape_cast %95 : vector<8x1x80xbf16> to vector<8x80xbf16>
    %cst_36 = arith.constant dense<0.000000e+00> : vector<8x16xf32>
    %97 = tpu.matmul %96, %86, %cst_36 {dimension_numbers = #tpu.dot_dimension_numbers<[1], [0], [0], [1], [0, 0, 1, 1], [], []>} : vector<8x80xbf16>, vector<80x16xbf16>, vector<8x16xf32> -> vector<8x16xf32>
    %98 = arith.addf %80, %97 : vector<8x16xf32>
    %cst_37 = arith.constant 0.000000e+00 : f32
    %99 = vector.broadcast %cst_37 : f32 to vector<8x16xf32>
    %100 = vector.broadcast %5 : vector<1x16xf32> to vector<8x16xf32>
    %101 = arith.addf %90, %100 : vector<8x16xf32>
    %cst_38 = arith.constant 0.000000e+00 : f32
    %102 = vector.broadcast %cst_38 : f32 to vector<8x16xf32>
    %103 = arith.maximumf %101, %102 : vector<8x16xf32>
    %104 = arith.truncf %103 : vector<8x16xf32> to vector<8x16xbf16>
    %c0_39 = arith.constant 0 : index
    %c0_40 = arith.constant 0 : index
    %c0_41 = arith.constant 0 : index
    %105 = vector.load %arg5[%c0_39, %c0_40, %c0_41] : memref<3x16x16xbf16, #tpu.memory_space<vmem>>, vector<1x16x16xbf16>
    %106 = vector.shape_cast %105 : vector<1x16x16xbf16> to vector<16x16xbf16>
    %cst_42 = arith.constant dense<0.000000e+00> : vector<8x16xf32>
    %107 = tpu.matmul %104, %106, %cst_42 {dimension_numbers = #tpu.dot_dimension_numbers<[1], [0], [0], [1], [0, 0, 1, 1], [], []>} : vector<8x16xbf16>, vector<16x16xbf16>, vector<8x16xf32> -> vector<8x16xf32>
    %108 = arith.addf %99, %107 : vector<8x16xf32>
    %109 = vector.broadcast %5 : vector<1x16xf32> to vector<8x16xf32>
    %110 = arith.addf %94, %109 : vector<8x16xf32>
    %cst_43 = arith.constant 0.000000e+00 : f32
    %111 = vector.broadcast %cst_43 : f32 to vector<8x16xf32>
    %112 = arith.maximumf %110, %111 : vector<8x16xf32>
    %113 = arith.truncf %112 : vector<8x16xf32> to vector<8x16xbf16>
    %c1_44 = arith.constant 1 : index
    %c0_45 = arith.constant 0 : index
    %c0_46 = arith.constant 0 : index
    %114 = vector.load %arg5[%c1_44, %c0_45, %c0_46] : memref<3x16x16xbf16, #tpu.memory_space<vmem>>, vector<1x16x16xbf16>
    %115 = vector.shape_cast %114 : vector<1x16x16xbf16> to vector<16x16xbf16>
    %cst_47 = arith.constant dense<0.000000e+00> : vector<8x16xf32>
    %116 = tpu.matmul %113, %115, %cst_47 {dimension_numbers = #tpu.dot_dimension_numbers<[1], [0], [0], [1], [0, 0, 1, 1], [], []>} : vector<8x16xbf16>, vector<16x16xbf16>, vector<8x16xf32> -> vector<8x16xf32>
    %117 = arith.addf %108, %116 : vector<8x16xf32>
    %118 = vector.broadcast %5 : vector<1x16xf32> to vector<8x16xf32>
    %119 = arith.addf %98, %118 : vector<8x16xf32>
    %cst_48 = arith.constant 0.000000e+00 : f32
    %120 = vector.broadcast %cst_48 : f32 to vector<8x16xf32>
    %121 = arith.maximumf %119, %120 : vector<8x16xf32>
    %122 = arith.truncf %121 : vector<8x16xf32> to vector<8x16xbf16>
    %c2_49 = arith.constant 2 : index
    %c0_50 = arith.constant 0 : index
    %c0_51 = arith.constant 0 : index
    %123 = vector.load %arg5[%c2_49, %c0_50, %c0_51] : memref<3x16x16xbf16, #tpu.memory_space<vmem>>, vector<1x16x16xbf16>
    %124 = vector.shape_cast %123 : vector<1x16x16xbf16> to vector<16x16xbf16>
    %cst_52 = arith.constant dense<0.000000e+00> : vector<8x16xf32>
    %125 = tpu.matmul %122, %124, %cst_52 {dimension_numbers = #tpu.dot_dimension_numbers<[1], [0], [0], [1], [0, 0, 1, 1], [], []>} : vector<8x16xbf16>, vector<16x16xbf16>, vector<8x16xf32> -> vector<8x16xf32>
    %126 = arith.addf %117, %125 : vector<8x16xf32>
    %c0_53 = arith.constant 0 : index
    %c0_54 = arith.constant 0 : index
    %127 = vector.load %arg7[%c0_53, %c0_54] : memref<1x16xf32, #tpu.memory_space<vmem>>, vector<1x16xf32>
    %128 = vector.broadcast %127 : vector<1x16xf32> to vector<8x16xf32>
    %129 = arith.addf %126, %128 : vector<8x16xf32>
    %cst_55 = arith.constant 4.000000e+00 : f32
    %130 = vector.broadcast %cst_55 : f32 to vector<8x16xf32>
    %131 = arith.mulf %129, %130 : vector<8x16xf32>
    %c0_56 = arith.constant 0 : index
    %c0_57 = arith.constant 0 : index
    %132 = vector.load %arg8[%c0_56, %c0_57] : memref<8x16xf32, #tpu.memory_space<vmem>>, vector<8x16xf32>
    %133 = arith.addf %131, %132 : vector<8x16xf32>
    %c0_58 = arith.constant 0 : index
    %c0_59 = arith.constant 0 : index
    %c0_60 = arith.constant 0 : index
    %134 = vector.load %arg9[%c0_58, %c0_59, %c0_60] : memref<1x8x16xf32, #tpu.memory_space<vmem>>, vector<1x8x16xf32>
    %135 = vector.shape_cast %134 : vector<1x8x16xf32> to vector<8x16xf32>
    %136 = vector.shape_cast %133 : vector<8x16xf32> to vector<1x8x16xf32>
    tpu.vector_store %arg9[%c0_58, %c0_59, %c0_60], %136 {strides = array<i32>} : memref<1x8x16xf32, #tpu.memory_space<vmem>>, vector<1x8x16xf32>,
    return
  }
  func.func @transform_0(%arg0: i32, %arg1: i32) -> (i32, i32, i32, i32) {
    %c0_i32 = arith.constant 0 : i32
    %c0_i32_0 = arith.constant 0 : i32
    %c0_i32_1 = arith.constant 0 : i32
    return %arg0, %arg1, %c0_i32, %c0_i32_0 : i32, i32, i32, i32
  }
  func.func @transform_1(%arg0: i32, %arg1: i32) -> (i32, i32, i32, i32) {
    %c1_i32 = arith.constant 1 : i32
    %0 = arith.addi %arg1, %c1_i32 : i32
    %c3_i32 = arith.constant 3 : i32
    %1 = arith.muli %c3_i32, %0 : i32
    %c0_i32 = arith.constant 0 : i32
    %c0_i32_0 = arith.constant 0 : i32
    %c0_i32_1 = arith.constant 0 : i32
    return %arg0, %1, %c0_i32, %c0_i32_0 : i32, i32, i32, i32
  }
  func.func @transform_2(%arg0: i32, %arg1: i32) -> (i32, i32, i32) {
    %c0_i32 = arith.constant 0 : i32
    %c0_i32_0 = arith.constant 0 : i32
    %c0_i32_1 = arith.constant 0 : i32
    %c0_i32_2 = arith.constant 0 : i32
    return %c0_i32, %c0_i32_0, %c0_i32_1 : i32, i32, i32
  }
  func.func @transform_3(%arg0: i32, %arg1: i32) -> (i32, i32, i32) {
    %c0_i32 = arith.constant 0 : i32
    %c0_i32_0 = arith.constant 0 : i32
    %c0_i32_1 = arith.constant 0 : i32
    %c0_i32_2 = arith.constant 0 : i32
    return %c0_i32, %c0_i32_0, %c0_i32_1 : i32, i32, i32
  }
  func.func @transform_4(%arg0: i32, %arg1: i32) -> (i32, i32) {
    %c0_i32 = arith.constant 0 : i32
    %c0_i32_0 = arith.constant 0 : i32
    %c0_i32_1 = arith.constant 0 : i32
    return %c0_i32, %c0_i32_0 : i32, i32
  }
  func.func @transform_5(%arg0: i32, %arg1: i32) -> (i32, i32) {
    %c0_i32 = arith.constant 0 : i32
    %c0_i32_0 = arith.constant 0 : i32
    %c0_i32_1 = arith.constant 0 : i32
    return %c0_i32, %c0_i32_0 : i32, i32
  }
  func.func @transform_6(%arg0: i32, %arg1: i32) -> (i32, i32) {
    %c0_i32 = arith.constant 0 : i32
    %c0_i32_0 = arith.constant 0 : i32
    return %arg1, %c0_i32 : i32, i32
  }
  func.func @transform_7(%arg0: i32, %arg1: i32) -> (i32, i32, i32) {
    %c0_i32 = arith.constant 0 : i32
    %c0_i32_0 = arith.constant 0 : i32
    return %arg0, %arg1, %c0_i32 : i32, i32, i32
  }
}

</mosaic_0001>

<bundles_post_ra>
// kernel: conv2d_subsampling6_forward.2
= control target key start
LH: loop header
LB: loop body
LE: loop exit
PB: predicated region body
PF: predicated region fallthrough
CT: control target
= control target key end

     0   :  { %vm194_vm0 = vcmask 1043456   ;;  %vm195_vm1 = vcmask 1044480   ;;  %v505_v2 = vmov 65535   ;;  %vm142_vm2 = vcmask 72704   ;;  %s770_s1 = inlined_call_operand.vmem [shape: bf16[9,16], index: 1, kind: input, shape index: {}]   ;;  %s771_s0 = inlined_call_operand.vmem [shape: bf16[264,9], index: 0, kind: input, shape index: {}]   ;;  %s772_s2 = inlined_call_operand.vmem [shape: f32[1,16], index: 2, kind: input, shape index: {}]   ;;  %s773_s3 = inlined_call_operand.vmem [shape: bf16[264,16], index: 3, kind: output, shape index: {}]  }
   0x1   :  { %v464_v0 = vld [vmem:[%s770_s1] sm:$0xf]  ;;  %v499_v1 = vld [vmem:[%s770_s1] sm:$0x10]  ;;  %v196_v3 = vsel %vm194_vm0, 4294967295, %v505_v2  ;;  %v488_v8 = vld [vmem:[%s771_s0 + $0x28] sm:$0xff] }
   0x2   :  { %v465_v4 = vor.u32 %v499_v1, %v464_v0  ;;  %v197_v5 = vsel %vm195_vm1, %v196_v3, 0  ;;  %v483_v7 = vld [vmem:[%s771_s0] sm:$0xff]  ;;  %v493_v9 = vld [vmem:[%s771_s0 + $0x50] sm:$0xff]  ;;  %v498_v10 = vld [vmem:[%s771_s0 + $0x78] sm:$0xff]  ;;  %vm360_vm3 = vcmask 125952  }
   0x3   :  { %v484_v11 = vld [vmem:[%s771_s0 + $0x8] sm:$0xff]  ;;  %v489_v12 = vld [vmem:[%s771_s0 + $0x30] sm:$0xff]  ;;  %v494_v13 = vld [vmem:[%s771_s0 + $0x58] sm:$0xff] }
   0x4   :  { %v199_v6 = vand.u32 %v465_v4, %v197_v5  ;;  %v47_v14 = vld [vmem:[%s771_s0 + $0x80] sm:$0xf]  ;;  %v485_v17 = vld [vmem:[%s771_s0 + $0x10] sm:$0xff]  ;;  %v490_v18 = vld [vmem:[%s771_s0 + $0x38] sm:$0xff] }
   0x5   :  { %v119_v15 = vunpack.c.l.b16 %v47_v14  ;;  %v495_v19 = vld [vmem:[%s771_s0 + $0x60] sm:$0xff]  ;;  %v486_v20 = vld [vmem:[%s771_s0 + $0x18] sm:$0xff]  ;;  %v496_v22 = vld [vmem:[%s771_s0 + $0x68] sm:$0xff] }
   0x6   :  { %208 = vmatpush.bf16.msra.mxu0 %v199_v6  ;;  %500 = vmatpush.bf16.msra.mxu1 %v199_v6  ;;  %v491_v21 = vld [vmem:[%s771_s0 + $0x40] sm:$0xff]  ;;  %v492_v24 = vld [vmem:[%s771_s0 + $0x48] sm:$0xff]  ;;  %v497_v25 = vld [vmem:[%s771_s0 + $0x70] sm:$0xff] }
   0x7   :  { %501 = vmatpush.bf16.msra.mxu2 %v199_v6  ;;  %502 = vmatpush.bf16.msra.mxu3 %v199_v6  ;;  %v136_v16 = vpack.c.b16 %v119_v15, %v119_v15  ;;  %v487_v23 = vld [vmem:[%s771_s0 + $0x20] sm:$0xff] }
   0x8   :  { %v603_v26 = vld [vmem:[%s772_s2] ss:$0 sm:$0xff] }
   0x9   :  { %466 = vmatmul.msk.bf16.vlgmr.msra.gmra.mxu0 %vm142_vm2, %v483_v7  ;;  %471 = vmatmul.msk.bf16.vlgmr.msra.gmra.mxu1 %vm142_vm2, %v488_v8 }
   0xa   :  { %476 = vmatmul.msk.bf16.vlgmr.msra.gmra.mxu2 %vm142_vm2, %v493_v9  ;;  %481 = vmatmul.msk.bf16.vlgmr.msra.gmra.mxu3 %vm142_vm2, %v498_v10 }
  0x19   :  { %467 = vmatmul.msk.bf16.gmra.mxu0 %vm142_vm2, %v484_v11  ;;  %472 = vmatmul.msk.bf16.gmra.mxu1 %vm142_vm2, %v489_v12 }
  0x1a   :  { %477 = vmatmul.msk.bf16.gmra.mxu2 %vm142_vm2, %v494_v13  ;;  %482 = vmatmul.msk.bf16.gmra.mxu3 %vm142_vm2, %v136_v16 }
  0x29   :  { %468 = vmatmul.msk.bf16.gmra.mxu0 %vm142_vm2, %v485_v17  ;;  %473 = vmatmul.msk.bf16.gmra.mxu1 %vm142_vm2, %v490_v18 }
  0x2a   :  { %478 = vmatmul.msk.bf16.gmra.mxu2 %vm142_vm2, %v495_v19 }
  0x39   :  { %469 = vmatmul.msk.bf16.gmra.mxu0 %vm142_vm2, %v486_v20  ;;  %474 = vmatmul.msk.bf16.gmra.mxu1 %vm142_vm2, %v491_v21 }
  0x3a   :  { %479 = vmatmul.msk.bf16.gmra.mxu2 %vm142_vm2, %v496_v22 }
  0x49   :  { %470 = vmatmul.msk.bf16.gmra.mxu0 %vm142_vm2, %v487_v23  ;;  %475 = vmatmul.msk.bf16.gmra.mxu1 %vm142_vm2, %v492_v24 }
  0x4a   :  { %480 = vmatmul.msk.bf16.gmra.mxu2 %vm142_vm2, %v497_v25 }
  0x86   :  { %v210_v27 = vpop.f32.mrf.mxu0  ;;  %v235_v28 = vpop.f32.mrf.mxu1 }
  0x87   :  { %v211_v29 = vadd.f32 %v603_v26, %v210_v27  ;;  %v236_v30 = vadd.f32 %v603_v26, %v235_v28 }
  0x89   :  { %v294_v31 = vmax.f32 %v211_v29, 0.0  ;;  %v304_v32 = vmax.f32 %v236_v30, 0.0 }
  0x8b   :  { %v327_v33 = vpack.c.bf16 %v294_v31, %v294_v31  ;;  %v337_v34 = vpack.c.bf16 %v304_v32, %v304_v32 }
  0x8d   :  { %361 = vst.msk [vmem:[%s773_s3] sm:$0xf] %vm360_vm3, %v327_v33  ;;  %v260_v35 = vpop.f32.mrf.mxu2  ;;  %v285_v59 = vpop.f32.mrf.mxu3 }
  0x8e   :  { %371 = vst.msk [vmem:[%s773_s3 + $0x28] sm:$0xf] %vm360_vm3, %v337_v34  ;;  %v261_v36 = vadd.f32 %v603_v26, %v260_v35  ;;  %v212_v37 = vpop.f32.mrf.mxu0  ;;  %v237_v38 = vpop.f32.mrf.mxu1  ;;  %v286_v0 = vadd.f32 %v603_v26, %v285_v59 }
  0x8f   :  { %v213_v39 = vadd.f32 %v603_v26, %v212_v37  ;;  %v238_v40 = vadd.f32 %v603_v26, %v237_v38 }
  0x90   :  { %v314_v41 = vmax.f32 %v261_v36, 0.0  ;;  %v324_v4 = vmax.f32 %v286_v0, 0.0 }
  0x91   :  { %v295_v42 = vmax.f32 %v213_v39, 0.0  ;;  %v305_v43 = vmax.f32 %v238_v40, 0.0 }
  0x92   :  { %v347_v44 = vpack.c.bf16 %v314_v41, %v314_v41  ;;  %v357_v10 = vpack.c.bf16 %v324_v4, %v324_v4 }
  0x93   :  { %v328_v45 = vpack.c.bf16 %v295_v42, %v295_v42  ;;  %v338_v46 = vpack.c.bf16 %v305_v43, %v305_v43 }
  0x94   :  { %381 = vst.msk [vmem:[%s773_s3 + $0x50] sm:$0xf] %vm360_vm3, %v347_v44 }
  0x95   :  { %362 = vst.msk [vmem:[%s773_s3 + $0x4] sm:$0xf] %vm360_vm3, %v328_v45  ;;  %v262_v47 = vpop.f32.mrf.mxu2  ;;  %v287_v11 = vpop.f32.mrf.mxu3 }
  0x96   :  { %372 = vst.msk [vmem:[%s773_s3 + $0x2c] sm:$0xf] %vm360_vm3, %v338_v46  ;;  %v263_v48 = vadd.f32 %v603_v26, %v262_v47  ;;  %v215_v49 = vpop.f32.mrf.mxu0  ;;  %v240_v50 = vpop.f32.mrf.mxu1  ;;  %v288_v13 = vadd.f32 %v603_v26, %v287_v11 }
  0x97   :  { %v216_v51 = vadd.f32 %v603_v26, %v215_v49  ;;  %v241_v52 = vadd.f32 %v603_v26, %v240_v50  ;;  %391 = vst.msk [vmem:[%s773_s3 + $0x78] sm:$0xf] %vm360_vm3, %v357_v10 }
  0x98   :  { %v315_v53 = vmax.f32 %v263_v48, 0.0  ;;  %v325_v19 = vmax.f32 %v288_v13, 0.0 }
  0x99   :  { %v296_v54 = vmax.f32 %v216_v51, 0.0  ;;  %v306_v55 = vmax.f32 %v241_v52, 0.0 }
  0x9a   :  { %v348_v56 = vpack.c.bf16 %v315_v53, %v315_v53  ;;  %v358_v23 = vpack.c.bf16 %v325_v19, %v325_v19 }
  0x9b   :  { %v329_v57 = vpack.c.bf16 %v296_v54, %v296_v54  ;;  %v339_v58 = vpack.c.bf16 %v306_v55, %v306_v55 }
  0x9c   :  { %382 = vst.msk [vmem:[%s773_s3 + $0x54] sm:$0xf] %vm360_vm3, %v348_v56 }
  0x9d   :  { %363 = vst.msk [vmem:[%s773_s3 + $0x8] sm:$0xf] %vm360_vm3, %v329_v57  ;;  %v265_v60 = vpop.f32.mrf.mxu2  ;;  %v290_v28 = vpop.f32.mrf.mxu3 }
  0x9e   :  { %373 = vst.msk [vmem:[%s773_s3 + $0x30] sm:$0xf] %vm360_vm3, %v339_v58  ;;  %v266_v61 = vadd.f32 %v603_v26, %v265_v60  ;;  %v217_v62 = vpop.f32.mrf.mxu0  ;;  %v242_v63 = vpop.f32.mrf.mxu1  ;;  %v291_v33 = vadd.f32 %v603_v26, %v290_v28 }
  0x9f   :  { %v218_v1 = vadd.f32 %v603_v26, %v217_v62  ;;  %v243_v2 = vadd.f32 %v603_v26, %v242_v63  ;;  %392 = vst.msk [vmem:[%s773_s3 + $0x7c] sm:$0xf] %vm360_vm3, %v358_v23 }
  0xa0   :  { %v316_v3 = vmax.f32 %v266_v61, 0.0  ;;  %v326_v37 = vmax.f32 %v291_v33, 0.0 }
  0xa1   :  { %v297_v5 = vmax.f32 %v218_v1, 0.0  ;;  %v307_v6 = vmax.f32 %v243_v2, 0.0 }
  0xa2   :  { %v349_v7 = vpack.c.bf16 %v316_v3, %v316_v3  ;;  %v359_v43 = vpack.c.bf16 %v326_v37, %v326_v37 }
  0xa3   :  { %v330_v8 = vpack.c.bf16 %v297_v5, %v297_v5  ;;  %v340_v9 = vpack.c.bf16 %v307_v6, %v307_v6 }
  0xa4   :  { %383 = vst.msk [vmem:[%s773_s3 + $0x58] sm:$0xf] %vm360_vm3, %v349_v7 }
  0xa5   :  { %364 = vst.msk [vmem:[%s773_s3 + $0xc] sm:$0xf] %vm360_vm3, %v330_v8  ;;  %v267_v12 = vpop.f32.mrf.mxu2  ;;  %v292_v44 = vpop.f32.mrf.mxu3 }
  0xa6   :  { %374 = vst.msk [vmem:[%s773_s3 + $0x34] sm:$0xf] %vm360_vm3, %v340_v9  ;;  %v268_v14 = vadd.f32 %v603_v26, %v267_v12  ;;  %v220_v15 = vpop.f32.mrf.mxu0  ;;  %v245_v16 = vpop.f32.mrf.mxu1 }
  0xa7   :  { %v221_v17 = vadd.f32 %v603_v26, %v220_v15  ;;  %v246_v18 = vadd.f32 %v603_v26, %v245_v16  ;;  %393 = vst.msk [vmem:[%s773_s3 + $0x80] sm:$0xf] %vm360_vm3, %v359_v43 }
  0xa8   :  { %v317_v20 = vmax.f32 %v268_v14, 0.0 }
  0xa9   :  { %v298_v21 = vmax.f32 %v221_v17, 0.0  ;;  %v308_v22 = vmax.f32 %v246_v18, 0.0 }
  0xaa   :  { %v350_v24 = vpack.c.bf16 %v317_v20, %v317_v20 }
  0xab   :  { %v331_v25 = vpack.c.bf16 %v298_v21, %v298_v21  ;;  %v341_v27 = vpack.c.bf16 %v308_v22, %v308_v22 }
  0xac   :  { %384 = vst.msk [vmem:[%s773_s3 + $0x5c] sm:$0xf] %vm360_vm3, %v350_v24 }
  0xad   :  { %365 = vst.msk [vmem:[%s773_s3 + $0x10] sm:$0xf] %vm360_vm3, %v331_v25  ;;  %v270_v29 = vpop.f32.mrf.mxu2 }
  0xae   :  { %375 = vst.msk [vmem:[%s773_s3 + $0x38] sm:$0xf] %vm360_vm3, %v341_v27  ;;  %v271_v30 = vadd.f32 %v603_v26, %v270_v29  ;;  %v222_v31 = vpop.f32.mrf.mxu0  ;;  %v247_v32 = vpop.f32.mrf.mxu1 }
  0xaf   :  { %v223_v34 = vadd.f32 %v603_v26, %v222_v31  ;;  %v248_v35 = vadd.f32 %v603_v26, %v247_v32 }
  0xb0   :  { %v318_v36 = vmax.f32 %v271_v30, 0.0 }
  0xb1   :  { %v299_v38 = vmax.f32 %v223_v34, 0.0  ;;  %v309_v39 = vmax.f32 %v248_v35, 0.0 }
  0xb2   :  { %v351_v40 = vpack.c.bf16 %v318_v36, %v318_v36 }
  0xb3   :  { %v332_v41 = vpack.c.bf16 %v299_v38, %v299_v38  ;;  %v342_v42 = vpack.c.bf16 %v309_v39, %v309_v39 }
  0xb4   :  { %385 = vst.msk [vmem:[%s773_s3 + $0x60] sm:$0xf] %vm360_vm3, %v351_v40 }
  0xb5   :  { %366 = vst.msk [vmem:[%s773_s3 + $0x14] sm:$0xf] %vm360_vm3, %v332_v41  ;;  %v272_v45 = vpop.f32.mrf.mxu2 }
  0xb6   :  { %376 = vst.msk [vmem:[%s773_s3 + $0x3c] sm:$0xf] %vm360_vm3, %v342_v42  ;;  %v273_v46 = vadd.f32 %v603_v26, %v272_v45  ;;  %v225_v47 = vpop.f32.mrf.mxu0  ;;  %v250_v48 = vpop.f32.mrf.mxu1 }
  0xb7   :  { %v226_v49 = vadd.f32 %v603_v26, %v225_v47  ;;  %v251_v50 = vadd.f32 %v603_v26, %v250_v48 }
  0xb8   :  { %v319_v51 = vmax.f32 %v273_v46, 0.0 }
  0xb9   :  { %v300_v52 = vmax.f32 %v226_v49, 0.0  ;;  %v310_v53 = vmax.f32 %v251_v50, 0.0 }
  0xba   :  { %v352_v54 = vpack.c.bf16 %v319_v51, %v319_v51 }
  0xbb   :  { %v333_v55 = vpack.c.bf16 %v300_v52, %v300_v52  ;;  %v343_v56 = vpack.c.bf16 %v310_v53, %v310_v53 }
  0xbc   :  { %386 = vst.msk [vmem:[%s773_s3 + $0x64] sm:$0xf] %vm360_vm3, %v352_v54 }
  0xbd   :  { %367 = vst.msk [vmem:[%s773_s3 + $0x18] sm:$0xf] %vm360_vm3, %v333_v55  ;;  %v275_v57 = vpop.f32.mrf.mxu2 }
  0xbe   :  { %377 = vst.msk [vmem:[%s773_s3 + $0x40] sm:$0xf] %vm360_vm3, %v343_v56  ;;  %v276_v58 = vadd.f32 %v603_v26, %v275_v57  ;;  %v227_v59 = vpop.f32.mrf.mxu0  ;;  %v252_v60 = vpop.f32.mrf.mxu1 }
  0xbf   :  { %v228_v61 = vadd.f32 %v603_v26, %v227_v59  ;;  %v253_v62 = vadd.f32 %v603_v26, %v252_v60 }
  0xc0   :  { %v320_v63 = vmax.f32 %v276_v58, 0.0 }
  0xc1   :  { %v301_v0 = vmax.f32 %v228_v61, 0.0  ;;  %v311_v1 = vmax.f32 %v253_v62, 0.0 }
  0xc2   :  { %v353_v2 = vpack.c.bf16 %v320_v63, %v320_v63 }
  0xc3   :  { %v334_v3 = vpack.c.bf16 %v301_v0, %v301_v0  ;;  %v344_v4 = vpack.c.bf16 %v311_v1, %v311_v1 }
  0xc4   :  { %387 = vst.msk [vmem:[%s773_s3 + $0x68] sm:$0xf] %vm360_vm3, %v353_v2 }
  0xc5   :  { %368 = vst.msk [vmem:[%s773_s3 + $0x1c] sm:$0xf] %vm360_vm3, %v334_v3  ;;  %v277_v5 = vpop.f32.mrf.mxu2 }
  0xc6   :  { %378 = vst.msk [vmem:[%s773_s3 + $0x44] sm:$0xf] %vm360_vm3, %v344_v4  ;;  %v278_v6 = vadd.f32 %v603_v26, %v277_v5  ;;  %v230_v7 = vpop.f32.mrf.mxu0  ;;  %v255_v8 = vpop.f32.mrf.mxu1 }
  0xc7   :  { %v231_v9 = vadd.f32 %v603_v26, %v230_v7  ;;  %v256_v10 = vadd.f32 %v603_v26, %v255_v8 }
  0xc8   :  { %v321_v11 = vmax.f32 %v278_v6, 0.0 }
  0xc9   :  { %v302_v12 = vmax.f32 %v231_v9, 0.0  ;;  %v312_v13 = vmax.f32 %v256_v10, 0.0 }
  0xca   :  { %v354_v14 = vpack.c.bf16 %v321_v11, %v321_v11 }
  0xcb   :  { %v335_v15 = vpack.c.bf16 %v302_v12, %v302_v12  ;;  %v345_v16 = vpack.c.bf16 %v312_v13, %v312_v13 }
  0xcc   :  { %388 = vst.msk [vmem:[%s773_s3 + $0x6c] sm:$0xf] %vm360_vm3, %v354_v14 }
  0xcd   :  { %369 = vst.msk [vmem:[%s773_s3 + $0x20] sm:$0xf] %vm360_vm3, %v335_v15  ;;  %v280_v17 = vpop.f32.mrf.mxu2 }
  0xce   :  { %379 = vst.msk [vmem:[%s773_s3 + $0x48] sm:$0xf] %vm360_vm3, %v345_v16  ;;  %v281_v18 = vadd.f32 %v603_v26, %v280_v17  ;;  %v232_v19 = vpop.f32.mrf.mxu0  ;;  %v257_v20 = vpop.f32.mrf.mxu1 }
  0xcf   :  { %v233_v21 = vadd.f32 %v603_v26, %v232_v19  ;;  %v258_v22 = vadd.f32 %v603_v26, %v257_v20 }
  0xd0   :  { %v322_v23 = vmax.f32 %v281_v18, 0.0 }
  0xd1   :  { %v303_v24 = vmax.f32 %v233_v21, 0.0  ;;  %v313_v25 = vmax.f32 %v258_v22, 0.0 }
  0xd2   :  { %v355_v27 = vpack.c.bf16 %v322_v23, %v322_v23 }
  0xd3   :  { %v336_v28 = vpack.c.bf16 %v303_v24, %v303_v24  ;;  %v346_v29 = vpack.c.bf16 %v313_v25, %v313_v25 }
  0xd4   :  { %389 = vst.msk [vmem:[%s773_s3 + $0x70] sm:$0xf] %vm360_vm3, %v355_v27 }
  0xd5   :  { %370 = vst.msk [vmem:[%s773_s3 + $0x24] sm:$0xf] %vm360_vm3, %v336_v28  ;;  %v282_v30 = vpop.f32.mrf.mxu2 }
  0xd6   :  { %380 = vst.msk [vmem:[%s773_s3 + $0x4c] sm:$0xf] %vm360_vm3, %v346_v29  ;;  %v283_v31 = vadd.f32 %v603_v26, %v282_v30 }
  0xd8   :  { %v323_v32 = vmax.f32 %v283_v31, 0.0 }
  0xda   :  { %v356_v33 = vpack.c.bf16 %v323_v32, %v323_v32 }
  0xdc   :  { %390 = vst.msk [vmem:[%s773_s3 + $0x74] sm:$0xf] %vm360_vm3, %v356_v33 }

// kernel: conv2d_subsampling6_forward.3
= control target key start
LH: loop header
LB: loop body
LE: loop exit
PB: predicated region body
PF: predicated region fallthrough
CT: control target
= control target key end

     0   :  { %s2152_s24 = smov 0   ;;  %s2154_s25 = smov 0   ;;  %s2674_s0 = inlined_call_operand.vmem [shape: bf16[2,32,3,80], index: 0, kind: input, shape index: {}, may-alias: {0,1}]   ;;  %s2675_s1 = inlined_call_operand.vmem [shape: bf16[2,32,3,80], index: 1, kind: input, shape index: {}, may-alias: {0,1}]   ;;  %s2676_s2 = inlined_call_operand.vmem [shape: bf16[5,80,16], index: 2, kind: input, shape index: {}]   ;;  %s2677_s3 = inlined_call_operand.vmem [shape: bf16[3,16,16], index: 3, kind: input, shape index: {}]   ;;  %s2678_s4 = inlined_call_operand.vmem [shape: f32[1,16], index: 4, kind: input, shape index: {}]   ;;  %s2679_s5 = inlined_call_operand.vmem [shape: f32[1,16], index: 5, kind: input, shape index: {}]   ;;  %s2680_s6 = inlined_call_operand.vmem [shape: f32[8,16], index: 6, kind: input, shape index: {}]   ;;  %s2681_s7 = inlined_call_operand.vmem [shape: f32[2,8,16], index: 7, kind: output, shape index: {}]  }
   0x1   :  { %s2156_s26 = smov 0  }
   0x2 LB: > { %s29_s27 = sadd.s32 1, %s2106_s25  ;;  %p1848_p0 = scmp.ge.s32.totalorder %s2110_s26, 1  ;;  %s2110_s26 = sphi %s2156_s26, %s17_s26   ;;  %s2106_s25 = sphi %s2154_s25, %s2683_s25   ;;  %s2102_s24 = sphi %s2152_s24, %s2682_s24  }
   0x3   : > { %p31_p1 = scmp.ge.s32.totalorder %s29_s27, 2  ;;  %p300_p2 = scmp.lt.s32.totalorder %s2110_s26, 3 }
   0x5   : > { %s2685_s27 = smov (%p31_p1, %s29_s27), 0  ;;  %p301_p3 = pnand %p1848_p0, %p300_p2 }
   0x6   : > { %p362_p4 = scmp.lt.s32.totalorder (!%p301_p3), %s2102_s24, 1 }
   0x7   : > { %304 = sbr.rel (%p301_p3) target bundleno = 779 (0x30b), region = 48 }
   0xc   : > { %v2042_v0 = vld [vmem:[%s2676_s2 + $0x48] sm:$0xff]  ;;  %v2037_v1 = vld [vmem:[%s2676_s2 + $0x20] sm:$0xff]  ;;  %s2687_s24 = smov (!%p362_p4, %s2102_s24), 1  ;;  %v2036_v3 = vld [vmem:[%s2676_s2 + $0x18] sm:$0xff]  ;;  %vm491_vm0 = vcmask 1041409   ;;  %vm494_vm1 = vcmask 1042434  }
   0xd   : > { %549 = vmatpush.bf16.msra.mxu0 %v2042_v0  ;;  %v2041_v2 = vld [vmem:[%s2676_s2 + $0x40] sm:$0xff]  ;;  %715 = vmatpush.bf16.msra.mxu2 %v2042_v0  ;;  %s2030_s13 = sshll.u32 %s2687_s24, 6  ;;  %v2040_v4 = vld [vmem:[%s2676_s2 + $0x38] sm:$0xff]  ;;  %v2039_v7 = vld [vmem:[%s2676_s2 + $0x30] sm:$0xff]  ;;  %vm497_vm2 = vcmask 1043459   ;;  %vm500_vm3 = vcmask 1044484  }
   0xe   : > { %651 = vmatpush.bf16.msra.mxu1 %v2037_v1  ;;  %779 = vmatpush.bf16.msra.mxu3 %v2037_v1  ;;  %s2190_s16 = scalar_lea.vmem %s2674_s0, %s2030_s13  ;;  %v2038_v9 = vld [vmem:[%s2676_s2 + $0x28] sm:$0xff]  ;;  %v2035_v13 = vld [vmem:[%s2676_s2 + $0x10] sm:$0xff]  ;;  %v2033_v19 = vld [vmem:[%s2676_s2] sm:$0xff]  ;;  %vm503_vm4 = vcmask 1045509   ;;  %vm506_vm5 = vcmask 1046534   ;;  %vm509_vm6 = vcmask 1047559  }
   0xf   : > { %v2196_v5 = vld [vmem:[%s2190_s16 + $0x2] sm:$0x3]  ;;  %v2199_v6 = vld [vmem:[%s2190_s16 + $0x8] sm:$0x3]  ;;  %v2207_v8 = vld [vmem:[%s2190_s16 + $0xe] sm:$0x3] }
  0x10   : > { %450 = vst [vmem:[#allocation1] ss:$4 sm:$0xff] %v2196_v5  ;;  %v2213_v10 = vld [vmem:[%s2190_s16 + $0x14] sm:$0x3]  ;;  %v2034_v14 = vld [vmem:[%s2676_s2 + $0x8] sm:$0xff]  ;;  %vm542_vm7 = vcmask 654336  }
  0x11   : > { %550 = vmatpush.bf16.msra.mxu0 %v2041_v2  ;;  %716 = vmatpush.bf16.msra.mxu2 %v2041_v2  ;;  %455 = vst [vmem:[#allocation1 + $0x20] ss:$4 sm:$0xff] %v2199_v6  ;;  %v2226_v15 = vld [vmem:[%s2676_s2 + $0x70] sm:$0xff]  ;;  %v2229_v16 = vld [vmem:[%s2190_s16 + $0x1a] sm:$0x3]  ;;  %s2032_s28 = sadd.s32 48, %s2030_s13 }
  0x12   : > { %652 = vmatpush.bf16.msra.mxu1 %v2036_v3  ;;  %780 = vmatpush.bf16.msra.mxu3 %v2036_v3  ;;  %v2233_v18 = vld [vmem:[%s2190_s16 + $0x20] sm:$0x3]  ;;  %v2241_v27 = vld [vmem:[%s2190_s16 + $0x26] sm:$0x3]  ;;  %v2246_v29 = vld [vmem:[%s2190_s16 + $0x2c] sm:$0x3]  ;;  %s2543_s8 = scalar_lea.vmem %s2675_s1, %s2032_s28 }
  0x13   : > { %v2253_v39 = vld [vmem:[%s2190_s16] sm:$0x3]  ;;  %v2257_v41 = vld [vmem:[%s2190_s16 + $0x6] sm:$0x3]  ;;  %v2265_v51 = vld [vmem:[%s2190_s16 + $0xc] sm:$0x3] }
  0x14   : > { %v2268_v53 = vld [vmem:[%s2190_s16 + $0x12] sm:$0x3]  ;;  %v2275_v56 = vld [vmem:[%s2190_s16 + $0x18] sm:$0x3]  ;;  %v2278_v58 = vld [vmem:[%s2190_s16 + $0x1e] sm:$0x3] }
  0x15   : > { %551 = vmatpush.bf16.msra.mxu0 %v2040_v4  ;;  %717 = vmatpush.bf16.msra.mxu2 %v2040_v4  ;;  %vm1655_vm8 = vcmask 130048   ;;  %s1853_s19 = sshll.u32 %s2687_s24, 3 }
  0x16   : > { %653 = vmatpush.bf16.msra.mxu1 %v2035_v13  ;;  %781 = vmatpush.bf16.msra.mxu3 %v2035_v13  ;;  %s399_s28 = scalar_lea.vmem %s2681_s7, %s1853_s19 }
  0x17   : > { %v451_v11 = vld.sshfl [vmem:[#allocation1] sm:$0xff pattern:$0x73625140] }
  0x18   : > { %v456_v12 = vld.sshfl [vmem:[#allocation1 + $0x20] sm:$0xff pattern:$0x73625140]  ;;  %459 = vst [vmem:[#allocation1] ss:$4 sm:$0xff] %v2207_v8  ;;  %v482_v23 = vunpack.c.l.b16 %v451_v11 }
  0x19   : > { %552 = vmatpush.bf16.msra.mxu0 %v2039_v7  ;;  %718 = vmatpush.bf16.msra.mxu2 %v2039_v7  ;;  %463 = vst [vmem:[#allocation1 + $0x20] ss:$4 sm:$0xff] %v2213_v10  ;;  %v483_v17 = vunpack.c.l.b16 %v456_v12 }
  0x1a   : > { %654 = vmatpush.bf16.msra.mxu1 %v2034_v14  ;;  %782 = vmatpush.bf16.msra.mxu3 %v2034_v14 }
  0x1b   : > { %v490_v24 = vrot.slane %v483_v17, 7 }
  0x1d   : > { %553 = vmatpush.bf16.msra.mxu0 %v2038_v9  ;;  %719 = vmatpush.bf16.msra.mxu2 %v2038_v9  ;;  %v492_v28 = vsel %vm491_vm0, %v490_v24, %v482_v23 }
  0x1e   : > { %655 = vmatpush.bf16.msra.mxu1 %v2033_v19  ;;  %783 = vmatpush.bf16.msra.mxu3 %v2033_v19 }
  0x1f   : > { %v460_v20 = vld.sshfl [vmem:[#allocation1] sm:$0xff pattern:$0x73625140] }
  0x20   : > { %v464_v21 = vld.sshfl [vmem:[#allocation1 + $0x20] sm:$0xff pattern:$0x73625140]  ;;  %467 = vst [vmem:[#allocation1] ss:$4 sm:$0xff] %v2229_v16  ;;  %v484_v22 = vunpack.c.l.b16 %v460_v20 }
  0x21   : > { %843 = vmatpush.bf16.msrb.mxu0 %v2042_v0  ;;  %1020 = vmatpush.bf16.msrb.mxu2 %v2226_v15  ;;  %471 = vst [vmem:[#allocation1 + $0x20] ss:$4 sm:$0xff] %v2233_v18  ;;  %v485_v25 = vunpack.c.l.b16 %v464_v21 }
  0x22   : > { %907 = vmatpush.bf16.msrb.mxu1 %v2037_v1  ;;  %v493_v26 = vrot.slane %v484_v22, 6  ;;  %1085 = vmatpush.bf16.msrb.mxu3 %v2226_v15 }
  0x23   : > { %v496_v31 = vrot.slane %v485_v25, 5 }
  0x24   : > { %v495_v34 = vsel %vm494_vm1, %v493_v26, %v492_v28 }
  0x25   : > { %844 = vmatpush.bf16.msrb.mxu0 %v2041_v2  ;;  %v498_v37 = vsel %vm497_vm2, %v496_v31, %v495_v34  ;;  %v2283_v2 = vld [vmem:[%s2190_s16 + $0x24] sm:$0x3] }
  0x26   : > { %908 = vmatpush.bf16.msrb.mxu1 %v2036_v3 }
  0x27   : > { %v468_v30 = vld.sshfl [vmem:[#allocation1] sm:$0xff pattern:$0x73625140] }
  0x28   : > { %v472_v32 = vld.sshfl [vmem:[#allocation1 + $0x20] sm:$0xff pattern:$0x73625140]  ;;  %475 = vst [vmem:[#allocation1] ss:$4 sm:$0xff] %v2241_v27  ;;  %v486_v33 = vunpack.c.l.b16 %v468_v30 }
  0x29   : > { %845 = vmatpush.bf16.msrb.mxu0 %v2040_v4  ;;  %479 = vst [vmem:[#allocation1 + $0x20] ss:$4 sm:$0xff] %v2246_v29  ;;  %v487_v35 = vunpack.c.l.b16 %v472_v32  ;;  %v2287_v4 = vld [vmem:[%s2190_s16 + $0x2a] sm:$0x3] }
  0x2a   : > { %v499_v36 = vrot.slane %v486_v33, 4  ;;  %909 = vmatpush.bf16.msrb.mxu1 %v2035_v13 }
  0x2b   : > { %v502_v38 = vrot.slane %v487_v35, 3 }
  0x2c   : > { %v501_v40 = vsel %vm500_vm3, %v499_v36, %v498_v37 }
  0x2d   : > { %846 = vmatpush.bf16.msrb.mxu0 %v2039_v7  ;;  %v504_v46 = vsel %vm503_vm4, %v502_v38, %v501_v40 }
  0x2e   : > { %910 = vmatpush.bf16.msrb.mxu1 %v2034_v14 }
  0x2f   : > { %v476_v42 = vld.sshfl [vmem:[#allocation1] sm:$0xff pattern:$0x73625140] }
  0x30   : > { %v480_v43 = vld.sshfl [vmem:[#allocation1 + $0x20] sm:$0xff pattern:$0x73625140]  ;;  %v488_v44 = vunpack.c.l.b16 %v476_v42  ;;  %560 = vst [vmem:[#allocation1] ss:$4 sm:$0xff] %v2253_v39 }
  0x31   : > { %847 = vmatpush.bf16.msrb.mxu0 %v2038_v9  ;;  %v489_v45 = vunpack.c.l.b16 %v480_v43  ;;  %565 = vst [vmem:[#allocation1 + $0x20] ss:$4 sm:$0xff] %v2257_v41 }
  0x32   : > { %v505_v47 = vrot.slane %v488_v44, 2  ;;  %911 = vmatpush.bf16.msrb.mxu1 %v2033_v19 }
  0x33   : > { %v508_v48 = vrot.slane %v489_v45, 1 }
  0x34   : > { %v507_v49 = vsel %vm506_vm5, %v505_v47, %v504_v46 }
  0x35   : > { %v510_v50 = vsel %vm509_vm6, %v508_v48, %v507_v49 }
  0x36   : > { %v511_v52 = vpack.c.b16 %v510_v50, %v510_v50 }
  0x37   : > { %v561_v54 = vld.sshfl [vmem:[#allocation1] sm:$0xff pattern:$0x73625140] }
  0x38   : > { %1884 = vmatmul.msk.bf16.vlgmr.msra.gmra.mxu0 %vm542_vm7, %v511_v52  ;;  %v566_v55 = vld.sshfl [vmem:[#allocation1 + $0x20] sm:$0xff pattern:$0x73625140]  ;;  %569 = vst [vmem:[#allocation1] ss:$4 sm:$0xff] %v2265_v51  ;;  %v592_v62 = vunpack.c.l.b16 %v561_v54 }
  0x39   : > { %1150 = vmatpush.bf16.msra.mxu0 %v2226_v15  ;;  %573 = vst [vmem:[#allocation1 + $0x20] ss:$4 sm:$0xff] %v2268_v53  ;;  %v593_v57 = vunpack.c.l.b16 %v566_v55  ;;  %v2046_v55 = vld [vmem:[%s2676_s2 + $0x68] sm:$0xff] }
  0x3a   : > { %1021 = vmatpush.bf16.msrb.mxu2 %v2046_v55  ;;  %1086 = vmatpush.bf16.msrb.mxu3 %v2046_v55 }
  0x3b   : > { %v600_v63 = vrot.slane %v593_v57, 7 }
  0x3d   : > { %v601_v3 = vsel %vm491_vm0, %v600_v63, %v592_v62  ;;  %1151 = vmatpush.bf16.msra.mxu0 %v2046_v55 }
  0x3f   : > { %v570_v59 = vld.sshfl [vmem:[#allocation1] sm:$0xff pattern:$0x73625140] }
  0x40   : > { %v574_v60 = vld.sshfl [vmem:[#allocation1 + $0x20] sm:$0xff pattern:$0x73625140]  ;;  %577 = vst [vmem:[#allocation1] ss:$4 sm:$0xff] %v2275_v56  ;;  %v594_v61 = vunpack.c.l.b16 %v570_v59 }
  0x41   : > { %581 = vst [vmem:[#allocation1 + $0x20] ss:$4 sm:$0xff] %v2278_v58  ;;  %v595_v0 = vunpack.c.l.b16 %v574_v60 }
  0x42   : > { %v602_v1 = vrot.slane %v594_v61, 6 }
  0x43   : > { %v604_v9 = vrot.slane %v595_v0, 5  ;;  %v2045_v0 = vld [vmem:[%s2676_s2 + $0x60] sm:$0xff] }
  0x44   : > { %v603_v13 = vsel %vm494_vm1, %v602_v1, %v601_v3  ;;  %1152 = vmatpush.bf16.msra.mxu0 %v2045_v0  ;;  %1022 = vmatpush.bf16.msrb.mxu2 %v2045_v0 }
  0x45   : > { %v605_v17 = vsel %vm497_vm2, %v604_v9, %v603_v13  ;;  %1087 = vmatpush.bf16.msrb.mxu3 %v2045_v0 }
  0x47   : > { %v578_v7 = vld.sshfl [vmem:[#allocation1] sm:$0xff pattern:$0x73625140] }
  0x48   : > { %v582_v11 = vld.sshfl [vmem:[#allocation1 + $0x20] sm:$0xff pattern:$0x73625140]  ;;  %585 = vst [vmem:[#allocation1] ss:$4 sm:$0xff] %v2283_v2  ;;  %v596_v12 = vunpack.c.l.b16 %v578_v7 }
  0x49   : > { %589 = vst [vmem:[#allocation1 + $0x20] ss:$4 sm:$0xff] %v2287_v4  ;;  %v597_v14 = vunpack.c.l.b16 %v582_v11 }
  0x4a   : > { %v606_v15 = vrot.slane %v596_v12, 4 }
  0x4b   : > { %v608_v19 = vrot.slane %v597_v14, 3 }
  0x4c   : > { %v607_v20 = vsel %vm500_vm3, %v606_v15, %v605_v17 }
  0x4d   : > { %v609_v25 = vsel %vm503_vm4, %v608_v19, %v607_v20 }
  0x4f   : > { %v586_v21 = vld.sshfl [vmem:[#allocation1] sm:$0xff pattern:$0x73625140] }
  0x50   : > { %v590_v22 = vld.sshfl [vmem:[#allocation1 + $0x20] sm:$0xff pattern:$0x73625140]  ;;  %v598_v23 = vunpack.c.l.b16 %v586_v21  ;;  %661 = vst [vmem:[#allocation1] ss:$4 sm:$0xff] %v2196_v5 }
  0x51   : > { %v599_v24 = vunpack.c.l.b16 %v590_v22  ;;  %665 = vst [vmem:[#allocation1 + $0x20] ss:$4 sm:$0xff] %v2199_v6 }
  0x52   : > { %v610_v26 = vrot.slane %v598_v23, 2 }
  0x53   : > { %v612_v28 = vrot.slane %v599_v24, 1 }
  0x54   : > { %v611_v30 = vsel %vm506_vm5, %v610_v26, %v609_v25 }
  0x55   : > { %v613_v31 = vsel %vm509_vm6, %v612_v28, %v611_v30  ;;  %v2044_v30 = vld [vmem:[%s2676_s2 + $0x58] sm:$0xff] }
  0x56   : > { %v614_v32 = vpack.c.b16 %v613_v31, %v613_v31  ;;  %1153 = vmatpush.bf16.msra.mxu0 %v2044_v30  ;;  %1023 = vmatpush.bf16.msrb.mxu2 %v2044_v30 }
  0x57   : > { %v662_v33 = vld.sshfl [vmem:[#allocation1] sm:$0xff pattern:$0x73625140]  ;;  %1088 = vmatpush.bf16.msrb.mxu3 %v2044_v30 }
  0x58   : > { %1905 = vmatmul.msk.bf16.vlgmr.msra.gmra.mxu1 %vm542_vm7, %v614_v32  ;;  %v666_v34 = vld.sshfl [vmem:[#allocation1 + $0x20] sm:$0xff pattern:$0x73625140]  ;;  %668 = vst [vmem:[#allocation1] ss:$4 sm:$0xff] %v2207_v8  ;;  %v686_v57 = vunpack.c.l.b16 %v662_v33 }
  0x59   : > { %671 = vst [vmem:[#allocation1 + $0x20] ss:$4 sm:$0xff] %v2213_v10  ;;  %v687_v59 = vunpack.c.l.b16 %v666_v34 }
  0x5a   : > { %v694_v7 = vrot.slane %v686_v57, 1 }
  0x5c   : > { %v695_v15 = vsel %vm491_vm0, %v687_v59, %v694_v7 }
  0x5f   : > { %v669_v35 = vld.sshfl [vmem:[#allocation1] sm:$0xff pattern:$0x73625140] }
  0x60   : > { %v672_v36 = vld.sshfl [vmem:[#allocation1 + $0x20] sm:$0xff pattern:$0x73625140]  ;;  %674 = vst [vmem:[#allocation1] ss:$4 sm:$0xff] %v2229_v16  ;;  %v688_v60 = vunpack.c.l.b16 %v669_v35 }
  0x61   : > { %677 = vst [vmem:[#allocation1 + $0x20] ss:$4 sm:$0xff] %v2233_v18  ;;  %v689_v61 = vunpack.c.l.b16 %v672_v36 }
  0x62   : > { %v696_v11 = vrot.slane %v688_v60, 7 }
  0x63   : > { %v698_v12 = vrot.slane %v689_v61, 6 }
  0x64   : > { %v697_v20 = vsel %vm494_vm1, %v696_v11, %v695_v15 }
  0x65   : > { %v699_v24 = vsel %vm497_vm2, %v698_v12, %v697_v20 }
  0x67   : > { %v675_v37 = vld.sshfl [vmem:[#allocation1] sm:$0xff pattern:$0x73625140] }
  0x68   : > { %v678_v38 = vld.sshfl [vmem:[#allocation1 + $0x20] sm:$0xff pattern:$0x73625140]  ;;  %680 = vst [vmem:[#allocation1] ss:$4 sm:$0xff] %v2241_v27  ;;  %v690_v62 = vunpack.c.l.b16 %v675_v37 }
  0x69   : > { %683 = vst [vmem:[#allocation1 + $0x20] ss:$4 sm:$0xff] %v2246_v29  ;;  %v691_v63 = vunpack.c.l.b16 %v678_v38 }
  0x6a   : > { %v700_v13 = vrot.slane %v690_v62, 5 }
  0x6b   : > { %v702_v17 = vrot.slane %v691_v63, 4 }
  0x6c   : > { %v701_v33 = vsel %vm500_vm3, %v700_v13, %v699_v24 }
  0x6d   : > { %v703_v36 = vsel %vm503_vm4, %v702_v17, %v701_v33 }
  0x6f   : > { %v681_v40 = vld.sshfl [vmem:[#allocation1] sm:$0xff pattern:$0x73625140] }
  0x70   : > { %v684_v42 = vld.sshfl [vmem:[#allocation1 + $0x20] sm:$0xff pattern:$0x73625140]  ;;  %725 = vst [vmem:[#allocation1] ss:$4 sm:$0xff] %v2253_v39  ;;  %v692_v1 = vunpack.c.l.b16 %v681_v40 }
  0x71   : > { %729 = vst [vmem:[#allocation1 + $0x20] ss:$4 sm:$0xff] %v2257_v41  ;;  %v693_v3 = vunpack.c.l.b16 %v684_v42 }
  0x72   : > { %v704_v19 = vrot.slane %v692_v1, 3 }
  0x73   : > { %v706_v21 = vrot.slane %v693_v3, 2 }
  0x77   : > { %v2308_v43 = vld.sshfl [vmem:[#allocation1] sm:$0xff pattern:$0x73625140] }
  0x78   : > { %v2310_v44 = vld.sshfl [vmem:[#allocation1 + $0x20] sm:$0xff pattern:$0x73625140]  ;;  %732 = vst [vmem:[#allocation1] ss:$4 sm:$0xff] %v2265_v51  ;;  %v750_v22 = vunpack.c.l.b16 %v2308_v43  ;;  %v705_v43 = vsel %vm506_vm5, %v704_v19, %v703_v36 }
  0x79   : > { %735 = vst [vmem:[#allocation1 + $0x20] ss:$4 sm:$0xff] %v2268_v53  ;;  %v751_v23 = vunpack.c.l.b16 %v2310_v44 }
  0x7a   : > { %v758_v40 = vrot.slane %v750_v22, 1 }
  0x7f   : > { %v2314_v45 = vld.sshfl [vmem:[#allocation1] sm:$0xff pattern:$0x73625140] }
  0x80   : > { %v2316_v46 = vld.sshfl [vmem:[#allocation1 + $0x20] sm:$0xff pattern:$0x73625140]  ;;  %738 = vst [vmem:[#allocation1] ss:$4 sm:$0xff] %v2275_v56  ;;  %v752_v25 = vunpack.c.l.b16 %v2314_v45 }
  0x81   : > { %741 = vst [vmem:[#allocation1 + $0x20] ss:$4 sm:$0xff] %v2278_v58  ;;  %v753_v26 = vunpack.c.l.b16 %v2316_v46  ;;  %v707_v46 = vsel %vm509_vm6, %v706_v21, %v705_v43 }
  0x82   : > { %v760_v44 = vrot.slane %v752_v25, 7 }
  0x83   : > { %v762_v45 = vrot.slane %v753_v26, 6 }
  0x87   : > { %v2320_v47 = vld.sshfl [vmem:[#allocation1] sm:$0xff pattern:$0x73625140] }
  0x88   : > { %v2322_v48 = vld.sshfl [vmem:[#allocation1 + $0x20] sm:$0xff pattern:$0x73625140]  ;;  %744 = vst [vmem:[#allocation1] ss:$4 sm:$0xff] %v2283_v2  ;;  %v754_v28 = vunpack.c.l.b16 %v2320_v47  ;;  %v759_v47 = vsel %vm491_vm0, %v751_v23, %v758_v40 }
  0x89   : > { %747 = vst [vmem:[#allocation1 + $0x20] ss:$4 sm:$0xff] %v2287_v4  ;;  %v755_v34 = vunpack.c.l.b16 %v2322_v48 }
  0x8a   : > { %v764_v48 = vrot.slane %v754_v28, 5 }
  0x8b   : > { %v766_v55 = vrot.slane %v755_v34, 4 }
  0x8f   : > { %v2326_v49 = vld.sshfl [vmem:[#allocation1] sm:$0xff pattern:$0x73625140] }
  0x90   : > { %v2328_v50 = vld.sshfl [vmem:[#allocation1 + $0x20] sm:$0xff pattern:$0x73625140]  ;;  %789 = vst [vmem:[#allocation1] ss:$4 sm:$0xff] %v2196_v5  ;;  %v2340_v5 = vld [vmem:[%s2676_s2 + $0x98] sm:$0xff]  ;;  %v756_v37 = vunpack.c.l.b16 %v2326_v49 }
  0x91   : > { %793 = vst [vmem:[#allocation1 + $0x20] ss:$4 sm:$0xff] %v2199_v6  ;;  %1257 = vmatpush.bf16.msra.mxu1 %v2340_v5  ;;  %v757_v38 = vunpack.c.l.b16 %v2328_v50  ;;  %v2043_v49 = vld [vmem:[%s2676_s2 + $0x50] sm:$0xff] }
  0x92   : > { %v768_v60 = vrot.slane %v756_v37, 3  ;;  %1154 = vmatpush.bf16.msra.mxu0 %v2043_v49  ;;  %1024 = vmatpush.bf16.msrb.mxu2 %v2043_v49 }
  0x93   : > { %v770_v61 = vrot.slane %v757_v38, 2  ;;  %1089 = vmatpush.bf16.msrb.mxu3 %v2043_v49 }
  0x97   : > { %v790_v52 = vld.sshfl [vmem:[#allocation1] sm:$0xff pattern:$0x73625140] }
  0x98   : > { %v794_v54 = vld.sshfl [vmem:[#allocation1 + $0x20] sm:$0xff pattern:$0x73625140]  ;;  %796 = vst [vmem:[#allocation1] ss:$4 sm:$0xff] %v2207_v8  ;;  %v814_v9 = vunpack.c.l.b16 %v790_v52  ;;  %v708_v52 = vpack.c.b16 %v707_v46, %v707_v46 }
  0x99   : > { %799 = vst [vmem:[#allocation1 + $0x20] ss:$4 sm:$0xff] %v2213_v10  ;;  %v815_v14 = vunpack.c.l.b16 %v794_v54  ;;  %v761_v54 = vsel %vm494_vm1, %v760_v44, %v759_v47 }
  0x9a   : > { %v822_v32 = vrot.slane %v814_v9, 2  ;;  %v763_v59 = vsel %vm497_vm2, %v762_v45, %v761_v54  ;;  %1906 = vmatmul.msk.bf16.vlgmr.msra.gmra.mxu2 %vm542_vm7, %v708_v52 }
  0x9b   : > { %v823_v42 = vrot.slane %v815_v14, 1  ;;  %v765_v63 = vsel %vm500_vm3, %v764_v48, %v763_v59  ;;  %1322 = vmatpush.bf16.msra.mxu2 %v2340_v5 }
  0x9c   : > { %v767_v0 = vsel %vm503_vm4, %v766_v55, %v765_v63 }
  0x9d   : > { %v824_v62 = vsel %vm491_vm0, %v823_v42, %v822_v32  ;;  %v769_v7 = vsel %vm506_vm5, %v768_v60, %v767_v0  ;;  %v403_v60 = vld [vmem:[%s2190_s16 + $0x4] sm:$0x3] }
  0x9e   : > { %v771_v13 = vsel %vm509_vm6, %v770_v61, %v769_v7 }
  0x9f   : > { %v797_v31 = vld.sshfl [vmem:[#allocation1] sm:$0xff pattern:$0x73625140]  ;;  %v772_v15 = vpack.c.b16 %v771_v13, %v771_v13 }
  0xa0   : > { %v800_v35 = vld.sshfl [vmem:[#allocation1 + $0x20] sm:$0xff pattern:$0x73625140]  ;;  %802 = vst [vmem:[#allocation1] ss:$4 sm:$0xff] %v2229_v16  ;;  %v816_v57 = vunpack.c.l.b16 %v797_v31 }
  0xa1   : > { %805 = vst [vmem:[#allocation1 + $0x20] ss:$4 sm:$0xff] %v2233_v18  ;;  %v817_v50 = vunpack.c.l.b16 %v800_v35  ;;  %1907 = vmatmul.msk.bf16.vlgmr.msra.gmra.mxu3 %vm542_vm7, %v772_v15  ;;  %v2051_v35 = vld [vmem:[%s2676_s2 + $0x90] sm:$0xff] }
  0xa2   : > { %v825_v12 = vsel %vm494_vm1, %v816_v57, %v824_v62  ;;  %1387 = vmatpush.bf16.msra.mxu3 %v2340_v5  ;;  %v2394_v5 = vld [vmem:[%s2676_s2 + $0xc0] sm:$0xff]  ;;  %1258 = vmatpush.bf16.msra.mxu1 %v2051_v35  ;;  %v406_v62 = vld [vmem:[%s2190_s16 + $0xa] sm:$0x3] }
  0xa3   : > { %v826_v3 = vrot.slane %v817_v50, 7  ;;  %1323 = vmatpush.bf16.msra.mxu2 %v2051_v35 }
  0xa5   : > { %v827_v19 = vsel %vm497_vm2, %v826_v3, %v825_v12 }
  0xa6   : > { %1388 = vmatpush.bf16.msra.mxu3 %v2051_v35 }
  0xa7   : > { %v803_v1 = vld.sshfl [vmem:[#allocation1] sm:$0xff pattern:$0x73625140] }
  0xa8   : > { %v806_v9 = vld.sshfl [vmem:[#allocation1 + $0x20] sm:$0xff pattern:$0x73625140]  ;;  %808 = vst [vmem:[#allocation1] ss:$4 sm:$0xff] %v2241_v27  ;;  %v818_v11 = vunpack.c.l.b16 %v803_v1 }
  0xa9   : > { %811 = vst [vmem:[#allocation1 + $0x20] ss:$4 sm:$0xff] %v2246_v29  ;;  %v819_v14 = vunpack.c.l.b16 %v806_v9 }
  0xaa   : > { %v828_v17 = vrot.slane %v818_v11, 6 }
  0xab   : > { %v830_v20 = vrot.slane %v819_v14, 5  ;;  %v409_v14 = vld [vmem:[%s2190_s16 + $0x10] sm:$0x3] }
  0xac   : > { %v829_v21 = vsel %vm500_vm3, %v828_v17, %v827_v19  ;;  %v412_v17 = vld [vmem:[%s2190_s16 + $0x16] sm:$0x3] }
  0xad   : > { %v831_v26 = vsel %vm503_vm4, %v830_v20, %v829_v21  ;;  %v2422_v21 = vld [vmem:[%s2190_s16 + $0x1c] sm:$0x3] }
  0xaf   : > { %v809_v22 = vld.sshfl [vmem:[#allocation1] sm:$0xff pattern:$0x73625140] }
  0xb0   : > { %v812_v23 = vld.sshfl [vmem:[#allocation1 + $0x20] sm:$0xff pattern:$0x73625140]  ;;  %v820_v24 = vunpack.c.l.b16 %v809_v22  ;;  %853 = vst [vmem:[#allocation1] ss:$4 sm:$0xff] %v2253_v39 }
  0xb1   : > { %v821_v25 = vunpack.c.l.b16 %v812_v23  ;;  %857 = vst [vmem:[#allocation1 + $0x20] ss:$4 sm:$0xff] %v2257_v41  ;;  %v2425_v22 = vld [vmem:[%s2190_s16 + $0x22] sm:$0x3] }
  0xb2   : > { %v832_v28 = vrot.slane %v820_v24, 4 }
  0xb3   : > { %v834_v30 = vrot.slane %v821_v25, 3  ;;  %v2430_v25 = vld [vmem:[%s2190_s16 + $0x28] sm:$0x3] }
  0xb4   : > { %v833_v31 = vsel %vm506_vm5, %v832_v28, %v831_v26  ;;  %v2433_v26 = vld [vmem:[%s2190_s16 + $0x2e] sm:$0x3] }
  0xb5   : > { %v835_v32 = vsel %vm509_vm6, %v834_v30, %v833_v31 }
  0xb6   : > { %v836_v33 = vpack.c.b16 %v835_v32, %v835_v32 }
  0xb7   : > { %v854_v34 = vld.sshfl [vmem:[#allocation1] sm:$0xff pattern:$0x73625140] }
  0xb8   : > { %1908 = vmatmul.msk.bf16.vlgmr.msrb.gmra.mxu0 %vm542_vm7, %v836_v33  ;;  %v858_v39 = vld.sshfl [vmem:[#allocation1 + $0x20] sm:$0xff pattern:$0x73625140]  ;;  %860 = vst [vmem:[#allocation1] ss:$4 sm:$0xff] %v2265_v51  ;;  %v878_v36 = vunpack.c.l.b16 %v854_v34 }
  0xb9   : > { %1494 = vmatpush.bf16.msrb.mxu0 %v2394_v5  ;;  %863 = vst [vmem:[#allocation1 + $0x20] ss:$4 sm:$0xff] %v2268_v53  ;;  %v879_v37 = vunpack.c.l.b16 %v858_v39 }
  0xba   : > { %v886_v42 = vrot.slane %v878_v36, 2 }
  0xbb   : > { %v887_v43 = vrot.slane %v879_v37, 1 }
  0xbd   : > { %v888_v46 = vsel %vm491_vm0, %v887_v43, %v886_v42 }
  0xbf   : > { %v861_v38 = vld.sshfl [vmem:[#allocation1] sm:$0xff pattern:$0x73625140] }
  0xc0   : > { %v864_v40 = vld.sshfl [vmem:[#allocation1 + $0x20] sm:$0xff pattern:$0x73625140]  ;;  %866 = vst [vmem:[#allocation1] ss:$4 sm:$0xff] %v2275_v56  ;;  %v880_v45 = vunpack.c.l.b16 %v861_v38 }
  0xc1   : > { %869 = vst [vmem:[#allocation1 + $0x20] ss:$4 sm:$0xff] %v2278_v58  ;;  %v881_v44 = vunpack.c.l.b16 %v864_v40 }
  0xc2   : > { %v889_v52 = vsel %vm494_vm1, %v880_v45, %v888_v46 }
  0xc3   : > { %v890_v48 = vrot.slane %v881_v44, 7  ;;  %v2460_v44 = vld [vmem:[%s2676_s2 + $0xb8] sm:$0xff] }
  0xc4   : > { %1495 = vmatpush.bf16.msrb.mxu0 %v2460_v44 }
  0xc5   : > { %v891_v57 = vsel %vm497_vm2, %v890_v48, %v889_v52  ;;  %v2050_v48 = vld [vmem:[%s2676_s2 + $0x88] sm:$0xff] }
  0xc6   : > { %1259 = vmatpush.bf16.msra.mxu1 %v2050_v48  ;;  %1324 = vmatpush.bf16.msra.mxu2 %v2050_v48 }
  0xc7   : > { %v867_v47 = vld.sshfl [vmem:[#allocation1] sm:$0xff pattern:$0x73625140]  ;;  %1389 = vmatpush.bf16.msra.mxu3 %v2050_v48 }
  0xc8   : > { %v870_v49 = vld.sshfl [vmem:[#allocation1 + $0x20] sm:$0xff pattern:$0x73625140]  ;;  %872 = vst [vmem:[#allocation1] ss:$4 sm:$0xff] %v2283_v2  ;;  %v882_v50 = vunpack.c.l.b16 %v867_v47 }
  0xc9   : > { %875 = vst [vmem:[#allocation1 + $0x20] ss:$4 sm:$0xff] %v2287_v4  ;;  %v883_v54 = vunpack.c.l.b16 %v870_v49 }
  0xca   : > { %v892_v55 = vrot.slane %v882_v50, 6 }
  0xcb   : > { %v894_v59 = vrot.slane %v883_v54, 5  ;;  %v2470_v54 = vld [vmem:[%s2676_s2 + $0xb0] sm:$0xff] }
  0xcc   : > { %v893_v61 = vsel %vm500_vm3, %v892_v55, %v891_v57  ;;  %1496 = vmatpush.bf16.msrb.mxu0 %v2470_v54 }
  0xcd   : > { %v895_v7 = vsel %vm503_vm4, %v894_v59, %v893_v61 }
  0xcf   : > { %v873_v63 = vld.sshfl [vmem:[#allocation1] sm:$0xff pattern:$0x73625140] }
  0xd0   : > { %v876_v0 = vld.sshfl [vmem:[#allocation1 + $0x20] sm:$0xff pattern:$0x73625140]  ;;  %v884_v1 = vunpack.c.l.b16 %v873_v63  ;;  %929 = vst [vmem:[#allocation1] ss:$4 sm:$0xff] %v403_v60 }
  0xd1   : > { %v885_v3 = vunpack.c.l.b16 %v876_v0  ;;  %934 = vst [vmem:[#allocation1 + $0x20] ss:$4 sm:$0xff] %v406_v62  ;;  %v2049_v0 = vld [vmem:[%s2676_s2 + $0x80] sm:$0xff] }
  0xd2   : > { %v896_v9 = vrot.slane %v884_v1, 4  ;;  %1260 = vmatpush.bf16.msra.mxu1 %v2049_v0  ;;  %1325 = vmatpush.bf16.msra.mxu2 %v2049_v0 }
  0xd3   : > { %v898_v11 = vrot.slane %v885_v3, 3  ;;  %1390 = vmatpush.bf16.msra.mxu3 %v2049_v0 }
  0xd4   : > { %v897_v12 = vsel %vm506_vm5, %v896_v9, %v895_v7 }
  0xd5   : > { %v899_v13 = vsel %vm509_vm6, %v898_v11, %v897_v12 }
  0xd6   : > { %v900_v15 = vpack.c.b16 %v899_v13, %v899_v13 }
  0xd7   : > { %v2418_v19 = vld.sshfl [vmem:[#allocation1] sm:$0xff pattern:$0x73625140] }
  0xd8   : > { %1909 = vmatmul.msk.bf16.vlgmr.msrb.gmra.mxu1 %vm542_vm7, %v900_v15  ;;  %v935_v20 = vld.sshfl [vmem:[#allocation1 + $0x20] sm:$0xff pattern:$0x73625140]  ;;  %938 = vst [vmem:[#allocation1] ss:$4 sm:$0xff] %v409_v14  ;;  %v961_v45 = vunpack.c.l.b16 %v2418_v19 }
  0xd9   : > { %942 = vst [vmem:[#allocation1 + $0x20] ss:$4 sm:$0xff] %v412_v17  ;;  %v962_v46 = vunpack.c.l.b16 %v935_v20 }
  0xdb   : > { %v969_v59 = vrot.slane %v962_v46, 7 }
  0xdd   : > { %v970_v3 = vsel %vm491_vm0, %v969_v59, %v961_v45 }
  0xdf   : > { %v939_v23 = vld.sshfl [vmem:[#allocation1] sm:$0xff pattern:$0x73625140] }
  0xe0   : > { %v943_v24 = vld.sshfl [vmem:[#allocation1 + $0x20] sm:$0xff pattern:$0x73625140]  ;;  %946 = vst [vmem:[#allocation1] ss:$4 sm:$0xff] %v2422_v21  ;;  %v963_v47 = vunpack.c.l.b16 %v939_v23  ;;  %v2487_v23 = vld [vmem:[%s2676_s2 + $0xa8] sm:$0xff] }
  0xe1   : > { %950 = vst [vmem:[#allocation1 + $0x20] ss:$4 sm:$0xff] %v2425_v22  ;;  %v964_v49 = vunpack.c.l.b16 %v943_v24  ;;  %1497 = vmatpush.bf16.msrb.mxu0 %v2487_v23 }
  0xe2   : > { %v971_v61 = vrot.slane %v963_v47, 6 }
  0xe4   : > { %v972_v11 = vsel %vm494_vm1, %v971_v61, %v970_v3 }
  0xe7   : > { %v947_v28 = vld.sshfl [vmem:[#allocation1] sm:$0xff pattern:$0x73625140] }
  0xe8   : > { %v951_v30 = vld.sshfl [vmem:[#allocation1 + $0x20] sm:$0xff pattern:$0x73625140]  ;;  %954 = vst [vmem:[#allocation1] ss:$4 sm:$0xff] %v2430_v25  ;;  %v965_v50 = vunpack.c.l.b16 %v947_v28 }
  0xe9   : > { %958 = vst [vmem:[#allocation1 + $0x20] ss:$4 sm:$0xff] %v2433_v26  ;;  %v966_v52 = vunpack.c.l.b16 %v951_v30 }
  0xea   : > { %v975_v63 = vrot.slane %v965_v50, 4 }
  0xeb   : > { %v977_v7 = vrot.slane %v966_v52, 3 }
  0xef   : > { %v955_v31 = vld.sshfl [vmem:[#allocation1] sm:$0xff pattern:$0x73625140] }
  0xf0   : > { %v959_v32 = vld.sshfl [vmem:[#allocation1 + $0x20] sm:$0xff pattern:$0x73625140]  ;;  %1031 = vst [vmem:[#allocation1] ss:$4 sm:$0xff] %v403_v60  ;;  %v967_v55 = vunpack.c.l.b16 %v955_v31 }
  0xf1   : > { %1035 = vst [vmem:[#allocation1 + $0x20] ss:$4 sm:$0xff] %v406_v62  ;;  %v968_v57 = vunpack.c.l.b16 %v959_v32  ;;  %v2048_v32 = vld [vmem:[%s2676_s2 + $0x78] sm:$0xff] }
  0xf2   : > { %v979_v9 = vrot.slane %v967_v55, 2  ;;  %1261 = vmatpush.bf16.msra.mxu1 %v2048_v32  ;;  %1326 = vmatpush.bf16.msra.mxu2 %v2048_v32 }
  0xf3   : > { %v981_v12 = vrot.slane %v968_v57, 1  ;;  %1391 = vmatpush.bf16.msra.mxu3 %v2048_v32 }
  0xf6   : > { %1559 = vmatpush.bf16.msrb.mxu1 %v2394_v5 }
  0xf7   : > { %v2437_v33 = vld.sshfl [vmem:[#allocation1] sm:$0xff pattern:$0x73625140] }
  0xf8   : > { %v2439_v34 = vld.sshfl [vmem:[#allocation1 + $0x20] sm:$0xff pattern:$0x73625140]  ;;  %1038 = vst [vmem:[#allocation1] ss:$4 sm:$0xff] %v409_v14  ;;  %v1056_v13 = vunpack.c.l.b16 %v2437_v33 }
  0xf9   : > { %1041 = vst [vmem:[#allocation1 + $0x20] ss:$4 sm:$0xff] %v412_v17 }
  0xfa   : > { %1560 = vmatpush.bf16.msrb.mxu1 %v2460_v44 }
  0xfe   : > { %1561 = vmatpush.bf16.msrb.mxu1 %v2470_v54 }
  0xff   : > { %v2441_v39 = vld.sshfl [vmem:[#allocation1] sm:$0xff pattern:$0x73625140] }
 0x100   : > { %v2443_v35 = vld.sshfl [vmem:[#allocation1 + $0x20] sm:$0xff pattern:$0x73625140]  ;;  %1044 = vst [vmem:[#allocation1] ss:$4 sm:$0xff] %v2422_v21 }
 0x101   : > { %1047 = vst [vmem:[#allocation1 + $0x20] ss:$4 sm:$0xff] %v2425_v22  ;;  %v1059_v19 = vunpack.c.l.b16 %v2443_v35 }
 0x102   : > { %1562 = vmatpush.bf16.msrb.mxu1 %v2487_v23 }
 0x103   : > { %v1068_v45 = vrot.slane %v1059_v19, 6 }
 0x107   : > { %v2447_v36 = vld.sshfl [vmem:[#allocation1] sm:$0xff pattern:$0x73625140] }
 0x108   : > { %v2449_v37 = vld.sshfl [vmem:[#allocation1 + $0x20] sm:$0xff pattern:$0x73625140]  ;;  %1050 = vst [vmem:[#allocation1] ss:$4 sm:$0xff] %v2430_v25  ;;  %v1060_v20 = vunpack.c.l.b16 %v2447_v36  ;;  %v1064_v36 = vrot.slane %v1056_v13, 1 }
 0x109   : > { %1053 = vst [vmem:[#allocation1 + $0x20] ss:$4 sm:$0xff] %v2433_v26  ;;  %v1061_v31 = vunpack.c.l.b16 %v2449_v37 }
 0x10f   : > { %v2453_v38 = vld.sshfl [vmem:[#allocation1] sm:$0xff pattern:$0x73625140] }
 0x110   : > { %v2455_v40 = vld.sshfl [vmem:[#allocation1 + $0x20] sm:$0xff pattern:$0x73625140]  ;;  %1096 = vst [vmem:[#allocation1] ss:$4 sm:$0xff] %v403_v60 }
 0x111   : > { %1100 = vst [vmem:[#allocation1 + $0x20] ss:$4 sm:$0xff] %v406_v62  ;;  %v973_v62 = vrot.slane %v964_v49, 5  ;;  %v1063_v35 = vunpack.c.l.b16 %v2455_v40  ;;  %v1072_v49 = vrot.slane %v1061_v31, 4 }
 0x113   : > { %v974_v15 = vsel %vm497_vm2, %v973_v62, %v972_v11  ;;  %v1076_v57 = vrot.slane %v1063_v35, 2 }
 0x114   : > { %v976_v30 = vsel %vm500_vm3, %v975_v63, %v974_v15 }
 0x117   : > { %v1097_v42 = vld.sshfl [vmem:[#allocation1] sm:$0xff pattern:$0x73625140] }
 0x118   : > { %v1101_v43 = vld.sshfl [vmem:[#allocation1 + $0x20] sm:$0xff pattern:$0x73625140]  ;;  %1103 = vst [vmem:[#allocation1] ss:$4 sm:$0xff] %v409_v14  ;;  %v1121_v60 = vunpack.c.l.b16 %v1097_v42  ;;  %v1057_v14 = vunpack.c.l.b16 %v2439_v34  ;;  %v978_v34 = vsel %vm503_vm4, %v977_v7, %v976_v30 }
 0x119   : > { %1106 = vst [vmem:[#allocation1 + $0x20] ss:$4 sm:$0xff] %v412_v17  ;;  %v1122_v1 = vunpack.c.l.b16 %v1101_v43  ;;  %v1058_v17 = vunpack.c.l.b16 %v2441_v39  ;;  %v1062_v39 = vunpack.c.l.b16 %v2453_v38  ;;  %v980_v37 = vsel %vm506_vm5, %v979_v9, %v978_v34  ;;  %v2053_v38 = vld [vmem:[%s2676_s2 + $0xa0] sm:$0xff] }
 0x11a   : > { %v1129_v28 = vrot.slane %v1121_v60, 2  ;;  %v982_v46 = vsel %vm509_vm6, %v981_v12, %v980_v37  ;;  %v1065_v47 = vsel %vm491_vm0, %v1057_v14, %v1064_v36  ;;  %1498 = vmatpush.bf16.msrb.mxu0 %v2053_v38  ;;  %1563 = vmatpush.bf16.msrb.mxu1 %v2053_v38 }
 0x11b   : > { %v1130_v42 = vrot.slane %v1122_v1, 1  ;;  %v1066_v43 = vrot.slane %v1058_v17, 7  ;;  %v983_v48 = vpack.c.b16 %v982_v46, %v982_v46  ;;  %v1074_v55 = vrot.slane %v1062_v39, 3 }
 0x11d   : > { %v1131_v59 = vsel %vm491_vm0, %v1130_v42, %v1129_v28  ;;  %1940 = vmatmul.msk.bf16.vlgmr.msrb.gmra.mxu2 %vm542_vm7, %v983_v48 }
 0x11e   : > { %1624 = vmatpush.bf16.msrb.mxu2 %v2394_v5 }
 0x11f   : > { %v1104_v24 = vld.sshfl [vmem:[#allocation1] sm:$0xff pattern:$0x73625140] }
 0x120   : > { %v1107_v33 = vld.sshfl [vmem:[#allocation1 + $0x20] sm:$0xff pattern:$0x73625140]  ;;  %1109 = vst [vmem:[#allocation1] ss:$4 sm:$0xff] %v2422_v21  ;;  %v1070_v21 = vrot.slane %v1060_v20, 5  ;;  %v1123_v50 = vunpack.c.l.b16 %v1104_v24 }
 0x121   : > { %1112 = vst [vmem:[#allocation1 + $0x20] ss:$4 sm:$0xff] %v2425_v22  ;;  %v1124_v40 = vunpack.c.l.b16 %v1107_v33  ;;  %v1067_v22 = vsel %vm494_vm1, %v1066_v43, %v1065_v47 }
 0x122   : > { %v1069_v52 = vsel %vm497_vm2, %v1068_v45, %v1067_v22  ;;  %v1132_v7 = vsel %vm494_vm1, %v1123_v50, %v1131_v59  ;;  %1625 = vmatpush.bf16.msrb.mxu2 %v2460_v44  ;;  %v425_v45 = vld [vmem:[%s2543_s8] sm:$0x3] }
 0x123   : > { %v1071_v60 = vsel %vm500_vm3, %v1070_v21, %v1069_v52  ;;  %v1133_v63 = vrot.slane %v1124_v40, 7 }
 0x124   : > { %v1073_v61 = vsel %vm503_vm4, %v1072_v49, %v1071_v60 }
 0x125   : > { %v1075_v0 = vsel %vm506_vm5, %v1074_v55, %v1073_v61  ;;  %v1134_v5 = vsel %vm497_vm2, %v1133_v63, %v1132_v7 }
 0x126   : > { %v1077_v9 = vsel %vm509_vm6, %v1076_v57, %v1075_v0  ;;  %1626 = vmatpush.bf16.msrb.mxu2 %v2470_v54 }
 0x127   : > { %v1110_v62 = vld.sshfl [vmem:[#allocation1] sm:$0xff pattern:$0x73625140]  ;;  %v1078_v12 = vpack.c.b16 %v1077_v9, %v1077_v9 }
 0x128   : > { %v1113_v1 = vld.sshfl [vmem:[#allocation1 + $0x20] sm:$0xff pattern:$0x73625140]  ;;  %1115 = vst [vmem:[#allocation1] ss:$4 sm:$0xff] %v2430_v25  ;;  %v1125_v3 = vunpack.c.l.b16 %v1110_v62 }
 0x129   : > { %1118 = vst [vmem:[#allocation1 + $0x20] ss:$4 sm:$0xff] %v2433_v26  ;;  %v1126_v11 = vunpack.c.l.b16 %v1113_v1  ;;  %1941 = vmatmul.msk.bf16.vlgmr.msrb.gmra.mxu3 %vm542_vm7, %v1078_v12 }
 0x12a   : > { %v1135_v13 = vrot.slane %v1125_v3, 6  ;;  %1627 = vmatpush.bf16.msrb.mxu2 %v2487_v23 }
 0x12b   : > { %v1137_v25 = vrot.slane %v1126_v11, 5 }
 0x12c   : > { %v1136_v14 = vsel %vm500_vm3, %v1135_v13, %v1134_v5 }
 0x12d   : > { %v1138_v44 = vsel %vm503_vm4, %v1137_v25, %v1136_v14 }
 0x12e   : > { %1628 = vmatpush.bf16.msrb.mxu2 %v2053_v38 }
 0x12f   : > { %v1116_v15 = vld.sshfl [vmem:[#allocation1] sm:$0xff pattern:$0x73625140] }
 0x130   : > { %v1119_v17 = vld.sshfl [vmem:[#allocation1 + $0x20] sm:$0xff pattern:$0x73625140]  ;;  %v1127_v19 = vunpack.c.l.b16 %v1116_v15  ;;  %1172 = vst [vmem:[#allocation1] ss:$4 sm:$0xff] %v2257_v41 }
 0x131   : > { %v1128_v26 = vunpack.c.l.b16 %v1119_v17  ;;  %1176 = vst [vmem:[#allocation1 + $0x20] ss:$4 sm:$0xff] %v2265_v51 }
 0x132   : > { %v1139_v20 = vrot.slane %v1127_v19, 4 }
 0x133   : > { %v1141_v24 = vrot.slane %v1128_v26, 3 }
 0x134   : > { %v1140_v28 = vsel %vm506_vm5, %v1139_v20, %v1138_v44 }
 0x135   : > { %v1142_v54 = vsel %vm509_vm6, %v1141_v24, %v1140_v28 }
 0x136   : > { %v1143_v30 = vpack.c.b16 %v1142_v54, %v1142_v54 }
 0x137   : > { %v1173_v31 = vld.sshfl [vmem:[#allocation1] sm:$0xff pattern:$0x73625140] }
 0x138   : > { %1942 = vmatmul.msk.bf16.vlgmr.msra.gmra.mxu0 %vm542_vm7, %v1143_v30  ;;  %v1177_v32 = vld.sshfl [vmem:[#allocation1 + $0x20] sm:$0xff pattern:$0x73625140]  ;;  %1179 = vst [vmem:[#allocation1] ss:$4 sm:$0xff] %v2268_v53  ;;  %v1198_v35 = vunpack.c.l.b16 %v1173_v31 }
 0x139   : > { %1182 = vst [vmem:[#allocation1 + $0x20] ss:$4 sm:$0xff] %v2275_v56  ;;  %v1199_v33 = vunpack.c.l.b16 %v1177_v32 }
 0x13b   : > { %v1206_v36 = vrot.slane %v1199_v33, 7 }
 0x13d   : > { %v1207_v43 = vsel %vm491_vm0, %v1206_v36, %v1198_v35 }
 0x13f   : > { %v1180_v34 = vld.sshfl [vmem:[#allocation1] sm:$0xff pattern:$0x73625140] }
 0x140   : > { %v1183_v23 = vld.sshfl [vmem:[#allocation1 + $0x20] sm:$0xff pattern:$0x73625140]  ;;  %1185 = vst [vmem:[#allocation1] ss:$4 sm:$0xff] %v2278_v58  ;;  %v1200_v39 = vunpack.c.l.b16 %v1180_v34 }
 0x141   : > { %1188 = vst [vmem:[#allocation1 + $0x20] ss:$4 sm:$0xff] %v2283_v2  ;;  %v1201_v42 = vunpack.c.l.b16 %v1183_v23 }
 0x142   : > { %v1208_v37 = vrot.slane %v1200_v39, 6 }
 0x143   : > { %v1210_v47 = vrot.slane %v1201_v42, 5 }
 0x144   : > { %v1209_v40 = vsel %vm494_vm1, %v1208_v37, %v1207_v43 }
 0x145   : > { %v1211_v49 = vsel %vm497_vm2, %v1210_v47, %v1209_v40 }
 0x147   : > { %v1186_v46 = vld.sshfl [vmem:[#allocation1] sm:$0xff pattern:$0x73625140] }
 0x148   : > { %v1189_v21 = vld.sshfl [vmem:[#allocation1 + $0x20] sm:$0xff pattern:$0x73625140]  ;;  %1191 = vst [vmem:[#allocation1] ss:$4 sm:$0xff] %v2287_v4  ;;  %v1202_v38 = vunpack.c.l.b16 %v1186_v46 }
 0x149   : > { %1195 = vst [vmem:[#allocation1 + $0x20] ss:$4 sm:$0xff] %v425_v45  ;;  %v1203_v48 = vunpack.c.l.b16 %v1189_v21 }
 0x14a   : > { %v1212_v22 = vrot.slane %v1202_v38, 4 }
 0x14b   : > { %v1214_v50 = vrot.slane %v1203_v48, 3 }
 0x14c   : > { %v1213_v52 = vsel %vm500_vm3, %v1212_v22, %v1211_v49 }
 0x14d   : > { %v1215_v61 = vsel %vm503_vm4, %v1214_v50, %v1213_v52 }
 0x14f   : > { %v1192_v55 = vld.sshfl [vmem:[#allocation1] sm:$0xff pattern:$0x73625140] }
 0x150   : > { %v1196_v57 = vld.sshfl [vmem:[#allocation1 + $0x20] sm:$0xff pattern:$0x73625140]  ;;  %v1204_v59 = vunpack.c.l.b16 %v1192_v55  ;;  %1268 = vst [vmem:[#allocation1] ss:$4 sm:$0xff] %v2257_v41 }
 0x151   : > { %v1205_v60 = vunpack.c.l.b16 %v1196_v57  ;;  %1272 = vst [vmem:[#allocation1 + $0x20] ss:$4 sm:$0xff] %v2265_v51 }
 0x152   : > { %v1216_v62 = vrot.slane %v1204_v59, 2 }
 0x153   : > { %v1218_v63 = vrot.slane %v1205_v60, 1 }
 0x154   : > { %v1217_v0 = vsel %vm506_vm5, %v1216_v62, %v1215_v61 }
 0x155   : > { %v1219_v1 = vsel %vm509_vm6, %v1218_v63, %v1217_v0 }
 0x156   : > { %v1220_v3 = vpack.c.b16 %v1219_v1, %v1219_v1 }
 0x157   : > { %v1269_v7 = vld.sshfl [vmem:[#allocation1] sm:$0xff pattern:$0x73625140] }
 0x158   : > { %1973 = vmatmul.msk.bf16.vlgmr.msra.gmra.mxu1 %vm542_vm7, %v1220_v3  ;;  %v1273_v9 = vld.sshfl [vmem:[#allocation1 + $0x20] sm:$0xff pattern:$0x73625140]  ;;  %1275 = vst [vmem:[#allocation1] ss:$4 sm:$0xff] %v2268_v53 }
 0x159   : > { %1278 = vst [vmem:[#allocation1 + $0x20] ss:$4 sm:$0xff] %v2275_v56  ;;  %v1294_v28 = vunpack.c.l.b16 %v1273_v9 }
 0x15f   : > { %v1276_v11 = vld.sshfl [vmem:[#allocation1] sm:$0xff pattern:$0x73625140] }
 0x160   : > { %v1279_v12 = vld.sshfl [vmem:[#allocation1 + $0x20] sm:$0xff pattern:$0x73625140]  ;;  %1281 = vst [vmem:[#allocation1] ss:$4 sm:$0xff] %v2278_v58 }
 0x161   : > { %1284 = vst [vmem:[#allocation1 + $0x20] ss:$4 sm:$0xff] %v2283_v2  ;;  %v1296_v54 = vunpack.c.l.b16 %v1279_v12 }
 0x163   : > { %v1305_v23 = vrot.slane %v1296_v54, 6 }
 0x167   : > { %v1282_v13 = vld.sshfl [vmem:[#allocation1] sm:$0xff pattern:$0x73625140] }
 0x168   : > { %v1285_v5 = vld.sshfl [vmem:[#allocation1 + $0x20] sm:$0xff pattern:$0x73625140]  ;;  %1287 = vst [vmem:[#allocation1] ss:$4 sm:$0xff] %v2287_v4 }
 0x169   : > { %1290 = vst [vmem:[#allocation1 + $0x20] ss:$4 sm:$0xff] %v425_v45  ;;  %v1298_v31 = vunpack.c.l.b16 %v1285_v5 }
 0x16b   : > { %v1309_v35 = vrot.slane %v1298_v31, 4 }
 0x16f   : > { %v1288_v25 = vld.sshfl [vmem:[#allocation1] sm:$0xff pattern:$0x73625140] }
 0x170   : > { %v1291_v14 = vld.sshfl [vmem:[#allocation1 + $0x20] sm:$0xff pattern:$0x73625140]  ;;  %1333 = vst [vmem:[#allocation1] ss:$4 sm:$0xff] %v2257_v41  ;;  %v1299_v32 = vunpack.c.l.b16 %v1288_v25 }
 0x171   : > { %1337 = vst [vmem:[#allocation1 + $0x20] ss:$4 sm:$0xff] %v2265_v51 }
 0x172   : > { %v1311_v43 = vrot.slane %v1299_v32, 3 }
 0x177   : > { %v1334_v15 = vld.sshfl [vmem:[#allocation1] sm:$0xff pattern:$0x73625140] }
 0x178   : > { %v1338_v17 = vld.sshfl [vmem:[#allocation1 + $0x20] sm:$0xff pattern:$0x73625140]  ;;  %1340 = vst [vmem:[#allocation1] ss:$4 sm:$0xff] %v2268_v53  ;;  %v1293_v53 = vunpack.c.l.b16 %v1269_v7  ;;  %v1358_v36 = vunpack.c.l.b16 %v1334_v15 }
 0x179   : > { %1343 = vst [vmem:[#allocation1 + $0x20] ss:$4 sm:$0xff] %v2275_v56  ;;  %v1295_v56 = vunpack.c.l.b16 %v1276_v11 }
 0x17a   : > { %v1301_v30 = vrot.slane %v1293_v53, 1  ;;  %v1366_v55 = vrot.slane %v1358_v36, 2 }
 0x17b   : > { %v1303_v34 = vrot.slane %v1295_v56, 7 }
 0x17c   : > { %v1302_v33 = vsel %vm491_vm0, %v1294_v28, %v1301_v30 }
 0x17d   : > { %v1304_v37 = vsel %vm494_vm1, %v1303_v34, %v1302_v33 }
 0x17e   : > { %v1306_v46 = vsel %vm497_vm2, %v1305_v23, %v1304_v37 }
 0x17f   : > { %v2566_v19 = vld.sshfl [vmem:[#allocation1] sm:$0xff pattern:$0x73625140] }
 0x180   : > { %v1344_v26 = vld.sshfl [vmem:[#allocation1 + $0x20] sm:$0xff pattern:$0x73625140]  ;;  %1346 = vst [vmem:[#allocation1] ss:$4 sm:$0xff] %v2278_v58  ;;  %v1360_v48 = vunpack.c.l.b16 %v2566_v19 }
 0x181   : > { %1349 = vst [vmem:[#allocation1 + $0x20] ss:$4 sm:$0xff] %v2283_v2  ;;  %v1297_v2 = vunpack.c.l.b16 %v1282_v13  ;;  %v1361_v21 = vunpack.c.l.b16 %v1344_v26 }
 0x183   : > { %v1307_v39 = vrot.slane %v1297_v2, 5  ;;  %v1370_v62 = vrot.slane %v1361_v21, 7 }
 0x185   : > { %v1308_v40 = vsel %vm500_vm3, %v1307_v39, %v1306_v46 }
 0x186   : > { %v1310_v50 = vsel %vm503_vm4, %v1309_v35, %v1308_v40 }
 0x187   : > { %v1347_v44 = vld.sshfl [vmem:[#allocation1] sm:$0xff pattern:$0x73625140]  ;;  %v1312_v61 = vsel %vm506_vm5, %v1311_v43, %v1310_v50 }
 0x188   : > { %v1350_v20 = vld.sshfl [vmem:[#allocation1 + $0x20] sm:$0xff pattern:$0x73625140]  ;;  %1352 = vst [vmem:[#allocation1] ss:$4 sm:$0xff] %v2287_v4  ;;  %v1300_v4 = vunpack.c.l.b16 %v1291_v14  ;;  %v1362_v38 = vunpack.c.l.b16 %v1347_v44 }
 0x189   : > { %1355 = vst [vmem:[#allocation1 + $0x20] ss:$4 sm:$0xff] %v425_v45  ;;  %v1359_v45 = vunpack.c.l.b16 %v1338_v17  ;;  %v1363_v22 = vunpack.c.l.b16 %v1350_v20 }
 0x18a   : > { %v1313_v47 = vrot.slane %v1300_v4, 2  ;;  %v1372_v63 = vrot.slane %v1362_v38, 6 }
 0x18b   : > { %v1367_v57 = vrot.slane %v1359_v45, 1  ;;  %v1374_v9 = vrot.slane %v1363_v22, 5 }
 0x18c   : > { %v1314_v3 = vsel %vm509_vm6, %v1313_v47, %v1312_v61 }
 0x18d   : > { %v1368_v7 = vsel %vm491_vm0, %v1367_v57, %v1366_v55  ;;  %v1315_v12 = vpack.c.b16 %v1314_v3, %v1314_v3 }
 0x18e   : > { %v1369_v13 = vsel %vm494_vm1, %v1360_v48, %v1368_v7 }
 0x18f   : > { %v1353_v41 = vld.sshfl [vmem:[#allocation1] sm:$0xff pattern:$0x73625140]  ;;  %v1371_v25 = vsel %vm497_vm2, %v1370_v62, %v1369_v13  ;;  %1974 = vmatmul.msk.bf16.vlgmr.msra.gmra.mxu2 %vm542_vm7, %v1315_v12 }
 0x190   : > { %v1356_v51 = vld.sshfl [vmem:[#allocation1 + $0x20] sm:$0xff pattern:$0x73625140]  ;;  %1409 = vst [vmem:[#allocation1] ss:$4 sm:$0xff] %v2199_v6  ;;  %v1364_v49 = vunpack.c.l.b16 %v1353_v41  ;;  %v1373_v17 = vsel %vm500_vm3, %v1372_v63, %v1371_v25 }
 0x191   : > { %1413 = vst [vmem:[#allocation1 + $0x20] ss:$4 sm:$0xff] %v2207_v8  ;;  %v1365_v52 = vunpack.c.l.b16 %v1356_v51  ;;  %v1375_v26 = vsel %vm503_vm4, %v1374_v9, %v1373_v17  ;;  %v2594_v41 = vld [vmem:[%s2543_s8 + $0x2] sm:$0x3] }
 0x192   : > { %v1376_v5 = vrot.slane %v1364_v49, 4 }
 0x193   : > { %v1378_v14 = vrot.slane %v1365_v52, 3 }
 0x194   : > { %v1377_v20 = vsel %vm506_vm5, %v1376_v5, %v1375_v26 }
 0x195   : > { %v1379_v51 = vsel %vm509_vm6, %v1378_v14, %v1377_v20  ;;  %v555_v20 = vpop.f32.mrf.mxu0 }
 0x197   : > { %v1410_v24 = vld.sshfl [vmem:[#allocation1] sm:$0xff pattern:$0x73625140] }
 0x198   : > { %v1414_v58 = vld.sshfl [vmem:[#allocation1 + $0x20] sm:$0xff pattern:$0x73625140]  ;;  %1416 = vst [vmem:[#allocation1] ss:$4 sm:$0xff] %v2213_v10  ;;  %v1435_v60 = vunpack.c.l.b16 %v1410_v24  ;;  %v1380_v24 = vpack.c.b16 %v1379_v51, %v1379_v51 }
 0x199   : > { %1419 = vst [vmem:[#allocation1 + $0x20] ss:$4 sm:$0xff] %v2229_v16  ;;  %v1436_v42 = vunpack.c.l.b16 %v1414_v58 }
 0x19a   : > { %1975 = vmatmul.msk.bf16.vlgmr.msra.gmra.mxu3 %vm542_vm7, %v1380_v24 }
 0x19b   : > { %v1443_v11 = vrot.slane %v1436_v42, 7 }
 0x19d   : > { %v1444_v44 = vsel %vm491_vm0, %v1443_v11, %v1435_v60 }
 0x19f   : > { %v1417_v59 = vld.sshfl [vmem:[#allocation1] sm:$0xff pattern:$0x73625140] }
 0x1a0   : > { %v1420_v0 = vld.sshfl [vmem:[#allocation1 + $0x20] sm:$0xff pattern:$0x73625140]  ;;  %1422 = vst [vmem:[#allocation1] ss:$4 sm:$0xff] %v2233_v18  ;;  %v1437_v1 = vunpack.c.l.b16 %v1417_v59 }
 0x1a1   : > { %1425 = vst [vmem:[#allocation1 + $0x20] ss:$4 sm:$0xff] %v2241_v27  ;;  %v1438_v15 = vunpack.c.l.b16 %v1420_v0 }
 0x1a2   : > { %v1445_v19 = vrot.slane %v1437_v1, 6 }
 0x1a3   : > { %v1447_v56 = vrot.slane %v1438_v15, 5 }
 0x1a4   : > { %v1446_v30 = vsel %vm494_vm1, %v1445_v19, %v1444_v44 }
 0x1a5   : > { %v1448_v31 = vsel %vm497_vm2, %v1447_v56, %v1446_v30 }
 0x1a7   : > { %v1423_v53 = vld.sshfl [vmem:[#allocation1] sm:$0xff pattern:$0x73625140] }
 0x1a8   : > { %v1426_v28 = vld.sshfl [vmem:[#allocation1 + $0x20] sm:$0xff pattern:$0x73625140]  ;;  %1428 = vst [vmem:[#allocation1] ss:$4 sm:$0xff] %v2246_v29  ;;  %v1439_v54 = vunpack.c.l.b16 %v1423_v53  ;;  %v721_v53 = vpop.f32.mrf.mxu2 }
 0x1a9   : > { %1432 = vst [vmem:[#allocation1 + $0x20] ss:$4 sm:$0xff] %v2594_v41  ;;  %v1440_v58 = vunpack.c.l.b16 %v1426_v28 }
 0x1aa   : > { %v1449_v2 = vrot.slane %v1439_v54, 4 }
 0x1ab   : > { %v1451_v32 = vrot.slane %v1440_v58, 3  ;;  %v557_v58 = vpop.f32.mrf.mxu0 }
 0x1ac   : > { %v1450_v4 = vsel %vm500_vm3, %v1449_v2, %v1448_v31 }
 0x1ad   : > { %v1452_v35 = vsel %vm503_vm4, %v1451_v32, %v1450_v4 }
 0x1af   : > { %v1429_v33 = vld.sshfl [vmem:[#allocation1] sm:$0xff pattern:$0x73625140] }
 0x1b0   : > { %v1433_v34 = vld.sshfl [vmem:[#allocation1 + $0x20] sm:$0xff pattern:$0x73625140]  ;;  %v1441_v23 = vunpack.c.l.b16 %v1429_v33  ;;  %1505 = vst [vmem:[#allocation1] ss:$4 sm:$0xff] %v2199_v6  ;;  %v723_v32 = vpop.f32.mrf.mxu2 }
 0x1b1   : > { %v1442_v39 = vunpack.c.l.b16 %v1433_v34  ;;  %1509 = vst [vmem:[#allocation1 + $0x20] ss:$4 sm:$0xff] %v2207_v8 }
 0x1b2   : > { %v1453_v36 = vrot.slane %v1441_v23, 2 }
 0x1b3   : > { %v1455_v42 = vrot.slane %v1442_v39, 1 }
 0x1b4   : > { %v1454_v37 = vsel %vm506_vm5, %v1453_v36, %v1452_v35 }
 0x1b5   : > { %v1456_v43 = vsel %vm509_vm6, %v1455_v42, %v1454_v37  ;;  %v849_v42 = vpop.f32.mrf.mxu0 }
 0x1b6   : > { %v1457_v45 = vpack.c.b16 %v1456_v43, %v1456_v43 }
 0x1b7   : > { %v1506_v46 = vld.sshfl [vmem:[#allocation1] sm:$0xff pattern:$0x73625140] }
 0x1b8   : > { %2006 = vmatmul.msk.bf16.vlgmr.msrb.gmra.mxu0 %vm542_vm7, %v1457_v45  ;;  %v1510_v47 = vld.sshfl [vmem:[#allocation1 + $0x20] sm:$0xff pattern:$0x73625140]  ;;  %1512 = vst [vmem:[#allocation1] ss:$4 sm:$0xff] %v2213_v10  ;;  %v1530_v21 = vunpack.c.l.b16 %v1506_v46  ;;  %v1026_v45 = vpop.f32.mrf.mxu2 }
 0x1b9   : > { %1515 = vst [vmem:[#allocation1 + $0x20] ss:$4 sm:$0xff] %v2229_v16  ;;  %v1531_v22 = vunpack.c.l.b16 %v1510_v47 }
 0x1ba   : > { %v1538_v49 = vrot.slane %v1530_v21, 1 }
 0x1bc   : > { %v1539_v55 = vsel %vm491_vm0, %v1531_v22, %v1538_v49 }
 0x1bf   : > { %v1513_v38 = vld.sshfl [vmem:[#allocation1] sm:$0xff pattern:$0x73625140] }
 0x1c0   : > { %v1516_v40 = vld.sshfl [vmem:[#allocation1 + $0x20] sm:$0xff pattern:$0x73625140]  ;;  %1518 = vst [vmem:[#allocation1] ss:$4 sm:$0xff] %v2233_v18  ;;  %v1532_v48 = vunpack.c.l.b16 %v1513_v38 }
 0x1c1   : > { %1521 = vst [vmem:[#allocation1 + $0x20] ss:$4 sm:$0xff] %v2241_v27  ;;  %v1533_v50 = vunpack.c.l.b16 %v1516_v40 }
 0x1c2   : > { %v1540_v52 = vrot.slane %v1532_v48, 7 }
 0x1c3   : > { %v1542_v59 = vrot.slane %v1533_v50, 6 }
 0x1c4   : > { %v1541_v62 = vsel %vm494_vm1, %v1540_v52, %v1539_v55  ;;  %v851_v52 = vpop.f32.mrf.mxu0 }
 0x1c5   : > { %v1543_v1 = vsel %vm497_vm2, %v1542_v59, %v1541_v62  ;;  %v1028_v59 = vpop.f32.mrf.mxu2 }
 0x1c7   : > { %v1519_v57 = vld.sshfl [vmem:[#allocation1] sm:$0xff pattern:$0x73625140] }
 0x1c8   : > { %v1522_v60 = vld.sshfl [vmem:[#allocation1 + $0x20] sm:$0xff pattern:$0x73625140]  ;;  %1524 = vst [vmem:[#allocation1] ss:$4 sm:$0xff] %v2246_v29  ;;  %v1534_v61 = vunpack.c.l.b16 %v1519_v57 }
 0x1c9   : > { %1527 = vst [vmem:[#allocation1 + $0x20] ss:$4 sm:$0xff] %v2594_v41  ;;  %v1535_v63 = vunpack.c.l.b16 %v1522_v60 }
 0x1ca   : > { %v1544_v0 = vrot.slane %v1534_v61, 5 }
 0x1cb   : > { %v1546_v3 = vrot.slane %v1535_v63, 4 }
 0x1cc   : > { %v1545_v7 = vsel %vm500_vm3, %v1544_v0, %v1543_v1 }
 0x1cd   : > { %v1547_v5 = vsel %vm503_vm4, %v1546_v3, %v1545_v7  ;;  %v1156_v3 = vpop.f32.mrf.mxu0 }
 0x1cf   : > { %v1525_v9 = vld.sshfl [vmem:[#allocation1] sm:$0xff pattern:$0x73625140] }
 0x1d0   : > { %v1528_v11 = vld.sshfl [vmem:[#allocation1 + $0x20] sm:$0xff pattern:$0x73625140]  ;;  %v1536_v12 = vunpack.c.l.b16 %v1525_v9  ;;  %1570 = vst [vmem:[#allocation1] ss:$4 sm:$0xff] %v2199_v6  ;;  %v657_v6 = vpop.f32.mrf.mxu1 }
 0x1d1   : > { %v1537_v13 = vunpack.c.l.b16 %v1528_v11  ;;  %1574 = vst [vmem:[#allocation1 + $0x20] ss:$4 sm:$0xff] %v2207_v8  ;;  %v658_v51 = vadd.f32 %v657_v6, %v555_v20  ;;  %v785_v8 = vpop.f32.mrf.mxu3  ;;  %v2058_v20 = vld [vmem:[%s2677_s3] sm:$0xff]  ;;  %v2060_v6 = vld [vmem:[%s2677_s3 + $0x10] sm:$0xff] }
 0x1d2   : > { %v1548_v25 = vrot.slane %v1536_v12, 3  ;;  %v786_v56 = vadd.f32 %v785_v8, %v721_v53  ;;  %1716 = vmatpush.bf16.msra.mxu0 %v2060_v6  ;;  %v2086_v8 = vld [vmem:[%s2678_s4] ss:$0 sm:$0xff] }
 0x1d3   : > { %v1550_v14 = vrot.slane %v1537_v13, 2  ;;  %v1030_v21 = vadd.f32 %v1026_v45, %v658_v51 }
 0x1d4   : > { %v1549_v15 = vsel %vm506_vm5, %v1548_v25, %v1547_v5 }
 0x1d5   : > { %v1551_v17 = vsel %vm509_vm6, %v1550_v14, %v1549_v15  ;;  %v1158_v12 = vpop.f32.mrf.mxu0 }
 0x1d6   : > { %v1552_v19 = vpack.c.b16 %v1551_v17, %v1551_v17 }
 0x1d7   : > { %v1571_v26 = vld.sshfl [vmem:[#allocation1] sm:$0xff pattern:$0x73625140] }
 0x1d8   : > { %2007 = vmatmul.msk.bf16.vlgmr.msrb.gmra.mxu1 %vm542_vm7, %v1552_v19  ;;  %v1575_v44 = vld.sshfl [vmem:[#allocation1 + $0x20] sm:$0xff pattern:$0x73625140]  ;;  %1577 = vst [vmem:[#allocation1] ss:$4 sm:$0xff] %v2213_v10  ;;  %v1595_v24 = vunpack.c.l.b16 %v1571_v26  ;;  %v659_v2 = vpop.f32.mrf.mxu1  ;;  %v2059_v26 = vld [vmem:[%s2677_s3 + $0x8] sm:$0xff] }
 0x1d9   : > { %1580 = vst [vmem:[#allocation1 + $0x20] ss:$4 sm:$0xff] %v2229_v16  ;;  %v1596_v28 = vunpack.c.l.b16 %v1575_v44  ;;  %v787_v4 = vpop.f32.mrf.mxu3  ;;  %1666 = vmatpush.bf16.msrb.mxu3 %v2059_v26 }
 0x1da   : > { %v1603_v31 = vrot.slane %v1595_v24, 2 }
 0x1db   : > { %v1604_v10 = vrot.slane %v1596_v28, 1 }
 0x1dd   : > { %v1605_v34 = vsel %vm491_vm0, %v1604_v10, %v1603_v31  ;;  %1688 = vmatpush.bf16.msra.mxu3 %v2058_v20 }
 0x1df   : > { %v1578_v54 = vld.sshfl [vmem:[#allocation1] sm:$0xff pattern:$0x73625140] }
 0x1e0   : > { %v1581_v30 = vld.sshfl [vmem:[#allocation1 + $0x20] sm:$0xff pattern:$0x73625140]  ;;  %1583 = vst [vmem:[#allocation1] ss:$4 sm:$0xff] %v2233_v18  ;;  %v1597_v16 = vunpack.c.l.b16 %v1578_v54  ;;  %v913_v37 = vpop.f32.mrf.mxu1 }
 0x1e1   : > { %1586 = vst [vmem:[#allocation1 + $0x20] ss:$4 sm:$0xff] %v2241_v27  ;;  %v1598_v33 = vunpack.c.l.b16 %v1581_v30  ;;  %v914_v43 = vadd.f32 %v913_v37, %v849_v42  ;;  %v1091_v46 = vpop.f32.mrf.mxu3  ;;  %v2087_v37 = vld [vmem:[%s2679_s5] ss:$0 sm:$0xff] }
 0x1e2   : > { %v1606_v18 = vsel %vm494_vm1, %v1597_v16, %v1605_v34  ;;  %v1095_v38 = vadd.f32 %v1091_v46, %v786_v56  ;;  %v1729_v46 = vld [vmem:[%s2680_s6] sm:$0xff] }
 0x1e3   : > { %v1607_v39 = vrot.slane %v1598_v33, 7  ;;  %v1160_v9 = vadd.f32 %v1156_v3, %v914_v43 }
 0x1e5   : > { %v1608_v40 = vsel %vm497_vm2, %v1607_v39, %v1606_v18 }
 0x1e7   : > { %v1584_v23 = vld.sshfl [vmem:[#allocation1] sm:$0xff pattern:$0x73625140] }
 0x1e8   : > { %v1587_v35 = vld.sshfl [vmem:[#allocation1 + $0x20] sm:$0xff pattern:$0x73625140]  ;;  %1589 = vst [vmem:[#allocation1] ss:$4 sm:$0xff] %v2246_v29  ;;  %v1599_v36 = vunpack.c.l.b16 %v1584_v23  ;;  %v915_v55 = vpop.f32.mrf.mxu1 }
 0x1e9   : > { %1592 = vst [vmem:[#allocation1 + $0x20] ss:$4 sm:$0xff] %v2594_v41  ;;  %v1600_v27 = vunpack.c.l.b16 %v1587_v35  ;;  %v1093_v60 = vpop.f32.mrf.mxu3 }
 0x1ea   : > { %v1609_v47 = vrot.slane %v1599_v36, 6 }
 0x1eb   : > { %v1611_v48 = vrot.slane %v1600_v27, 5 }
 0x1ec   : > { %v1610_v22 = vsel %vm500_vm3, %v1609_v47, %v1608_v40 }
 0x1ed   : > { %v1612_v41 = vsel %vm503_vm4, %v1611_v48, %v1610_v22 }
 0x1ef   : > { %v1590_v29 = vld.sshfl [vmem:[#allocation1] sm:$0xff pattern:$0x73625140] }
 0x1f0   : > { %v1593_v49 = vld.sshfl [vmem:[#allocation1 + $0x20] sm:$0xff pattern:$0x73625140]  ;;  %v1601_v50 = vunpack.c.l.b16 %v1590_v29  ;;  %v1263_v7 = vpop.f32.mrf.mxu1 }
 0x1f1   : > { %v1602_v57 = vunpack.c.l.b16 %v1593_v49  ;;  %v1267_v11 = vadd.f32 %v1263_v7, %v1030_v21 }
 0x1f2   : > { %v1613_v61 = vrot.slane %v1601_v50, 4 }
 0x1f3   : > { %v1615_v62 = vrot.slane %v1602_v57, 3 }
 0x1f4   : > { %v1614_v63 = vsel %vm506_vm5, %v1613_v61, %v1612_v41 }
 0x1f5   : > { %v1616_v0 = vsel %vm509_vm6, %v1615_v62, %v1614_v63 }
 0x1f6   : > { %v1617_v1 = vpack.c.b16 %v1616_v0, %v1616_v0 }
 0x1f8   : > { %2008 = vmatmul.msk.bf16.vlgmr.msrb.gmra.mxu2 %vm542_vm7, %v1617_v1  ;;  %v1265_v13 = vpop.f32.mrf.mxu1 }
 0x212   : > { %v1328_v5 = vpop.f32.mrf.mxu2 }
 0x213   : > { %v1332_v51 = vadd.f32 %v1328_v5, %v1095_v38 }
 0x21a   : > { %v1330_v15 = vpop.f32.mrf.mxu2 }
 0x21d   : > { %v1393_v25 = vpop.f32.mrf.mxu3 }
 0x21e   : > { %v1397_v14 = vadd.f32 %v1393_v25, %v1160_v9 }
 0x225   : > { %v1395_v17 = vpop.f32.mrf.mxu3 }
 0x235   : > { %v1500_v19 = vpop.f32.mrf.mxu0 }
 0x236   : > { %v1504_v58 = vadd.f32 %v1500_v19, %v1267_v11 }
 0x238   : > { %v1638_v2 = vadd.f32 %v2086_v8, %v1504_v58 }
 0x23a   : > { %v1639_v31 = vmax.f32 %v1638_v2, 0.0 }
 0x23c   : > { %v1640_v10 = vpack.c.bf16 %v1639_v31, %v1639_v31 }
 0x23d   : > { %v1502_v44 = vpop.f32.mrf.mxu0 }
 0x255   : > { %v1565_v53 = vpop.f32.mrf.mxu1 }
 0x256   : > { %v1569_v56 = vadd.f32 %v1565_v53, %v1332_v51 }
 0x258   : > { %v1643_v24 = vadd.f32 %v2086_v8, %v1569_v56 }
 0x25a   : > { %v1644_v28 = vmax.f32 %v1643_v24, 0.0 }
 0x25c   : > { %v1645_v54 = vpack.c.bf16 %v1644_v28, %v1644_v28 }
 0x25d   : > { %v1567_v30 = vpop.f32.mrf.mxu1 }
 0x25e   : > { %2015 = vmatmul.msk.bf16.vlgmr.msrb.gmra.mxu3 %vm1655_vm8, %v1645_v54 }
 0x26e   : > { %2020 = vmatmul.msk.bf16.vlgmr.msra.gmra.mxu3 %vm1655_vm8, %v1640_v10 }
 0x27b   : > { %v1630_v32 = vpop.f32.mrf.mxu2 }
 0x27c   : > { %v1634_v4 = vadd.f32 %v1630_v32, %v1397_v14 }
 0x27e   : > { %v1694_v33 = vadd.f32 %v2086_v8, %v1634_v4 }
 0x280   : > { %v1695_v16 = vmax.f32 %v1694_v33, 0.0 }
 0x282   : > { %v1696_v34 = vpack.c.bf16 %v1695_v16, %v1695_v16 }
 0x283   : > { %v1632_v23 = vpop.f32.mrf.mxu2 }
 0x284   : > { %2027 = vmatmul.msk.bf16.vlgmr.msra.gmra.mxu0 %vm1655_vm8, %v1696_v34 }
 0x2e1   : > { %v1668_v39 = vpop.f32.mrf.mxu3 }
 0x2e9   : > { %v1670_v35 = vpop.f32.mrf.mxu3 }
 0x2f1   : > { %v1690_v36 = vpop.f32.mrf.mxu3 }
 0x2f2   : > { %v1691_v42 = vadd.f32 %v1690_v36, %v1668_v39 }
 0x2f9   : > { %v1692_v18 = vpop.f32.mrf.mxu3 }
 0x301   : > { %v1718_v27 = vpop.f32.mrf.mxu0 }
 0x302   : > { %v1722_v43 = vadd.f32 %v1718_v27, %v1691_v42 }
 0x304   : > { %v1727_v45 = vadd.f32 %v2087_v37, %v1722_v43 }
 0x306   : > { %v1728_v47 = vmul.f32 4.0, %v1727_v45 }
 0x308   : > { %v1730_v21 = vadd.f32 %v1729_v46, %v1728_v47 }
 0x309   : > { %v1720_v38 = vpop.f32.mrf.mxu0 }
 0x30a   : > { %1731 = vst.msk [vmem:[%s399_s28] sm:$0xff] %vm1655_vm8, %v1730_v21 }
 0x30b PF: > { %s17_s26 = sadd.s32 1, %s2110_s26   ;;  %s2682_s24 = smov %s2106_s25 }
 0x30c   : > { %p14_p5 = scmp.ge.s32.totalorder %s17_s26, 4   ;;  %s2683_s25 = smov %s2685_s27 }
 0x30e   :  { %16 = sbr.rel (!%p14_p5) target bundleno = 2 (0x2), region = 105 }

</bundles_post_ra>
